<compile_context>
chip_gen: v7x
topology: tpu7x:2x2x1
jax: 0.10.0
libtpu: 0.0.40
codegen_flags: <defaults>
</compile_context>

<pallas_src>
import functools
import math

import jax
import jax.numpy as jnp
from jax import lax
from jax.experimental import pallas as pl
from jax.experimental.pallas import tpu as pltpu


# ----------------------------- in-kernel helpers -----------------------------

def _mm_nt(a, b, dtype=jnp.float32):
    """a @ b.T (contract last dims) with f32 accumulation on the MXU."""
    return lax.dot_general(
        a.astype(dtype), b.astype(dtype),
        (((1,), (1,)), ((), ())), preferred_element_type=jnp.float32)


def _layernorm(x, w, b, eps=1e-5):
    mu = jnp.mean(x, axis=-1, keepdims=True)
    var = jnp.mean((x - mu) ** 2, axis=-1, keepdims=True)
    return (x - mu) * lax.rsqrt(var + eps) * w + b


def _gelu_tanh(x):
    # TODO(synk): PyTorch nn.GELU() is the exact erf form; erf has no guaranteed
    # Mosaic lowering, so we use the tanh approximation (~3e-4 abs err).
    c = math.sqrt(2.0 / math.pi)
    return 0.5 * x * (1.0 + jnp.tanh(c * (x + 0.044715 * x * x * x)))


def _softmax_last(s):
    m = jnp.max(s, axis=-1, keepdims=True)
    e = jnp.exp(s - m)
    return e * pl.reciprocal(jnp.sum(e, axis=-1, keepdims=True), approx=True)


# --------------------------------- fused kernel -------------------------------

def fused_transformer_kernel(
        # pipelined over the grid
        x_ref,
        ln1w_ref, ln1b_ref, wqkv_ref, wo_ref, bo_ref,
        ln2w_ref, ln2b_ref, w1_ref, b1_ref, w2_ref, b2_ref,
        # VMEM-resident (layer-invariant, not double-buffered)
        win_ref, pe_ref,
        lnfw_ref, lnfb_ref, wg_ref, bg_ref, wout_ref, bout_ref,
        # output
        out_ref,
        # scratch: activation carried across the layer axis
        h_ref,
        *, heads, scale, mm_dtype):
    layer = pl.program_id(1)
    n_layers = pl.num_programs(1)
    Bblk, N, D = h_ref.shape
    hd = D // heads
    BN = Bblk * N

    # ---- first step along the layer axis: input projection + pos-encoding ----
    @pl.when(layer == 0)
    def _():
        x2 = x_ref[...].reshape(BN, x_ref.shape[-1])
        h0 = _mm_nt(x2, win_ref[...], mm_dtype)                       # (BN, D)
        # pe_ref already carries the input-projection bias folded in (1, N, D)
        h_ref[...] = h0.reshape(Bblk, N, D) + pe_ref[...]

    # ------------------- transformer block `layer` (every step) ----------------
    h = h_ref[...]                                                    # (Bblk, N, D)
    z = _layernorm(h, ln1w_ref[0], ln1b_ref[0])
    # fused QKV projection: one wide (BN, D) x (D, 3D) matmul
    qkv = _mm_nt(z.reshape(BN, D), wqkv_ref[0], mm_dtype)             # (BN, 3D)

    head_outs = []
    for hh in range(heads):      # static unroll; fine for small head counts
        q = qkv[:, hh * hd:(hh + 1) * hd].reshape(Bblk, N, hd)
        k = qkv[:, D + hh * hd:D + (hh + 1) * hd].reshape(Bblk, N, hd)
        v = qkv[:, 2 * D + hh * hd:2 * D + (hh + 1) * hd].reshape(Bblk, N, hd)
        dots = jnp.einsum('bqd,bkd->bqk', q.astype(mm_dtype), k.astype(mm_dtype),
                          preferred_element_type=jnp.float32) * scale
        p = _softmax_last(dots)                                       # (Bblk, N, N)
        head_outs.append(
            jnp.einsum('bqk,bkd->bqd', p.astype(mm_dtype), v.astype(mm_dtype),
                       preferred_element_type=jnp.float32))           # (Bblk, N, hd)

    # concat heads -> single (BN, D) x (D, D) output-projection matmul
    o_cat = jnp.concatenate(head_outs, axis=-1).reshape(BN, D)
    attn = _mm_nt(o_cat, wo_ref[0], mm_dtype) + bo_ref[0]             # (BN, D)
    h = h + attn.reshape(Bblk, N, D)                                  # residual 1

    z2 = _layernorm(h, ln2w_ref[0], ln2b_ref[0]).reshape(BN, D)
    f = _gelu_tanh(_mm_nt(z2, w1_ref[0], mm_dtype) + b1_ref[0])       # (BN, F)
    f = _mm_nt(f, w2_ref[0], mm_dtype) + b2_ref[0]                    # (BN, D)
    h = h + f.reshape(Bblk, N, D)                                     # residual 2
    h_ref[...] = h

    # ---- last step: final LN + global-attention pooling + output projection ----
    @pl.when(layer == n_layers - 1)
    def _():
        zf = _layernorm(h, lnfw_ref[...], lnfb_ref[...])              # (Bblk, N, D)
        # global_attn: Linear(D, 1) -> softmax over the sequence axis
        # (done as a VPU reduction; a (BN, D) x (D, 1) matmul would waste the MXU)
        logits = jnp.sum(zf * wg_ref[...], axis=-1, keepdims=True) + bg_ref[...]
        m = jnp.max(logits, axis=1, keepdims=True)
        e = jnp.exp(logits - m)
        w = e * pl.reciprocal(jnp.sum(e, axis=1, keepdims=True), approx=True)
        pooled = jnp.sum(zf * w, axis=1)                              # (Bblk, D)
        # lane-dense padded output slab (Bblk, O_pad): unmasked full-lane store
        out_ref[...] = _mm_nt(pooled, wout_ref[...], mm_dtype) + bout_ref[...]


# ------------------------------ pallas wrapper --------------------------------

def transformer_forward_pallas(x, params, heads, *, batch_block=None,
                               matmul_dtype=jnp.float32):
    B, N, Din = x.shape
    D = params["Win"].shape[0]
    L = params["Wqkv"].shape[0]
    F = params["W1"].shape[1]
    O = params["Wout"].shape[0]
    Bblk = B if batch_block is None else batch_block
    assert B % Bblk == 0 and D % heads == 0
    O_pad = ((O + 127) // 128) * 128            # lane-dense output slab

    # pad the output projection so the kernel writes full 128-lane stores
    Wout_p = jnp.zeros((O_pad, D), jnp.float32).at[:O].set(params["Wout"])
    bout_p = jnp.zeros((1, O_pad), jnp.float32).at[:, :O].set(params["bout"])
    # fold the input-projection bias into the positional-encoding slab
    pe_b = params["pe"] + params["bin"][None]                          # (1, N, D)

    scale = float(D) ** (-0.5)                  # PyTorch SelfAttention: dim**-0.5
    kernel = functools.partial(fused_transformer_kernel,
                               heads=heads, scale=scale, mm_dtype=matmul_dtype)

    lmap = lambda b, l: (l, 0, 0)               # per-layer stacked weights
    resident = pl.BlockSpec(memory_space=pltpu.MemorySpace.VMEM)

    out = pl.pallas_call(
        kernel,
        out_shape=jax.ShapeDtypeStruct((B, O_pad), jnp.float32),
        grid=(B // Bblk, L),
        in_specs=[
            pl.BlockSpec((Bblk, N, Din), lambda b, l: (b, 0, 0)),    # x
            pl.BlockSpec((1, 1, D), lmap),                           # ln1_w
            pl.BlockSpec((1, 1, D), lmap),                           # ln1_b
            pl.BlockSpec((1, 3 * D, D), lmap),                       # Wqkv (fused)
            pl.BlockSpec((1, D, D), lmap),                           # Wo
            pl.BlockSpec((1, 1, D), lmap),                           # bo
            pl.BlockSpec((1, 1, D), lmap),                           # ln2_w
            pl.BlockSpec((1, 1, D), lmap),                           # ln2_b
            pl.BlockSpec((1, F, D), lmap),                           # W1
            pl.BlockSpec((1, 1, F), lmap),                           # b1
            pl.BlockSpec((1, D, F), lmap),                           # W2
            pl.BlockSpec((1, 1, D), lmap),                           # b2
            resident, resident,                                      # Win, pe(+bin)
            resident, resident,                                      # lnf_w, lnf_b
            resident, resident,                                      # Wg, bg
            resident, resident,                                      # Wout_p, bout_p
        ],
        out_specs=pl.BlockSpec((Bblk, O_pad), lambda b, l: (b, 0)),
        scratch_shapes=[pltpu.VMEM((Bblk, N, D), jnp.float32)],      # carried activation
        compiler_params=pltpu.CompilerParams(
            dimension_semantics=("parallel", "arbitrary")),
        # NOTE: at these sizes the default scoped-VMEM limit is ample; for larger
        # models set vmem_limit_bytes per generation (v7x has 64 MiB physical).
    )(x,
      params["ln1_w"], params["ln1_b"], params["Wqkv"], params["Wo"], params["bo"],
      params["ln2_w"], params["ln2_b"], params["W1"], params["b1"],
      params["W2"], params["b2"],
      params["Win"], pe_b,
      params["lnf_w"], params["lnf_b"], params["Wg"], params["bg"],
      Wout_p, bout_p)
    return out[:, :O]


# ----------------------------- parameter creation -----------------------------

def kaiming_normal(key, shape):
    # kaiming_normal_(nonlinearity='relu'), fan_in mode: std = sqrt(2 / fan_in)
    fan_in = shape[1]
    std = math.sqrt(2.0 / fan_in)
    return (std * jax.random.normal(key, shape)).astype(jnp.float32)


def make_pos_encoding(N, D):
    position = jnp.arange(N, dtype=jnp.float32)[:, None]
    div_term = jnp.exp(jnp.arange(0, D, 2, dtype=jnp.float32) * (-math.log(10000.0) / D))
    pe = jnp.zeros((N, D), jnp.float32)
    pe = pe.at[:, 0::2].set(jnp.sin(position * div_term))
    pe = pe.at[:, 1::2].set(jnp.cos(position * div_term))
    return pe


def init_params(key, input_dim, output_dim, d_model, n_layers, heads, ff_dim, seq_len):
    ks = jax.random.split(key, 3 + 4 * n_layers)
    params = {
        "Win": kaiming_normal(ks[0], (d_model, input_dim)),
        "bin": jnp.zeros((1, d_model), jnp.float32),
        "pe": make_pos_encoding(seq_len, d_model)[None],       # (1, N, D)
        "lnf_w": jnp.ones((1, d_model), jnp.float32),
        "lnf_b": jnp.zeros((1, d_model), jnp.float32),
        "Wg": kaiming_normal(ks[1], (1, d_model)),
        "bg": jnp.zeros((1, 1), jnp.float32),
        "Wout": kaiming_normal(ks[2], (output_dim, d_model)),
        "bout": jnp.zeros((1, output_dim), jnp.float32),
    }
    Wqkv, Wo, W1, W2 = [], [], [], []
    for l in range(n_layers):
        k0, k1, k2, k3 = jax.random.split(ks[3 + l], 4)
        Wqkv.append(kaiming_normal(k0, (3 * d_model, d_model)))  # to_qkv (no bias)
        Wo.append(kaiming_normal(k1, (d_model, d_model)))        # to_out Linear
        W1.append(kaiming_normal(k2, (ff_dim, d_model)))
        W2.append(kaiming_normal(k3, (d_model, ff_dim)))
    L = n_layers
    params.update({
        "Wqkv": jnp.stack(Wqkv), "Wo": jnp.stack(Wo),
        "W1": jnp.stack(W1), "W2": jnp.stack(W2),
        "bo": jnp.zeros((L, 1, d_model), jnp.float32),
        "b1": jnp.zeros((L, 1, ff_dim), jnp.float32),
        "b2": jnp.zeros((L, 1, d_model), jnp.float32),
        "ln1_w": jnp.ones((L, 1, d_model), jnp.float32),
        "ln1_b": jnp.zeros((L, 1, d_model), jnp.float32),
        "ln2_w": jnp.ones((L, 1, d_model), jnp.float32),
        "ln2_b": jnp.zeros((L, 1, d_model), jnp.float32),
    })
    return params


# ------------------------------ pure-JAX reference -----------------------------

def reference_forward(x, params, heads):
    def ln(t, w, b, eps=1e-5):
        mu = t.mean(-1, keepdims=True)
        var = ((t - mu) ** 2).mean(-1, keepdims=True)
        return (t - mu) / jnp.sqrt(var + eps) * w + b

    B, N, _ = x.shape
    D = params["Win"].shape[0]
    H = heads
    hd = D // H
    scale = float(D) ** (-0.5)

    h = jnp.einsum("bni,di->bnd", x, params["Win"]) + params["bin"] + params["pe"]
    L = params["Wqkv"].shape[0]
    for l in range(L):
        z = ln(h, params["ln1_w"][l], params["ln1_b"][l])
        qkv = jnp.einsum("bnd,kd->bnk", z, params["Wqkv"][l])
        q, k, v = jnp.split(qkv, 3, axis=-1)
        sp = lambda t: t.reshape(B, N, H, hd).transpose(0, 2, 1, 3)
        q, k, v = sp(q), sp(k), sp(v)
        dots = jnp.einsum("bhqd,bhkd->bhqk", q, k) * scale
        p = jax.nn.softmax(dots, axis=-1)
        o = jnp.einsum("bhqk,bhkd->bhqd", p, v)
        o = o.transpose(0, 2, 1, 3).reshape(B, N, D)
        h = h + jnp.einsum("bnd,kd->bnk", o, params["Wo"][l]) + params["bo"][l]
        z = ln(h, params["ln2_w"][l], params["ln2_b"][l])
        f = _gelu_tanh(jnp.einsum("bnd,fd->bnf", z, params["W1"][l]) + params["b1"][l])
        f = jnp.einsum("bnf,df->bnd", f, params["W2"][l]) + params["b2"][l]
        h = h + f
    z = ln(h, params["lnf_w"], params["lnf_b"])
    logits = jnp.einsum("bnd,od->bno", z, params["Wg"]) + params["bg"]
    w = jax.nn.softmax(logits, axis=1)
    pooled = jnp.sum(z * w, axis=1)
    return jnp.einsum("bd,od->bo", pooled, params["Wout"]) + params["bout"]


# ------------------------------------ main -------------------------------------

if __name__ == "__main__":
    B, N = 2, 8
    input_dim, output_dim = 16, 4
    d_model, n_layers, heads, ff_dim = 32, 2, 2, 64

    key = jax.random.PRNGKey(0)
    kx, kp = jax.random.split(key)
    x = jax.random.normal(kx, (B, N, input_dim), dtype=jnp.float32)
    params = init_params(kp, input_dim, output_dim, d_model, n_layers, heads, ff_dim, N)

    # matmul_dtype=jnp.bfloat16 is recommended for v6e/v7x MXU peak; f32 here so
    # the self-check against the f32 reference stays tight.
    out = transformer_forward_pallas(x, params, heads, matmul_dtype=jnp.float32)
    out = jax.block_until_ready(out)

    ref = reference_forward(x, params, heads)
    assert out.shape == (B, output_dim)
    # approx-reciprocal softmax denominators introduce ~1e-4-level relative error
    assert jnp.allclose(out, ref, atol=5e-3, rtol=5e-3), (out, ref)
    print("KERNEL_OK")
</pallas_src>

<mosaic_0001>
module attributes {stable_mosaic.version = 11 : i64} {
  func.func @fused_transformer_kernel(%arg0: i32, %arg1: i32, %arg2: memref<2x8x16xf32, #tpu.memory_space<vmem>>, %arg3: memref<1x1x32xf32, #tpu.memory_space<vmem>>, %arg4: memref<1x1x32xf32, #tpu.memory_space<vmem>>, %arg5: memref<1x96x32xf32, #tpu.memory_space<vmem>>, %arg6: memref<1x32x32xf32, #tpu.memory_space<vmem>>, %arg7: memref<1x1x32xf32, #tpu.memory_space<vmem>>, %arg8: memref<1x1x32xf32, #tpu.memory_space<vmem>>, %arg9: memref<1x1x32xf32, #tpu.memory_space<vmem>>, %arg10: memref<1x64x32xf32, #tpu.memory_space<vmem>>, %arg11: memref<1x1x64xf32, #tpu.memory_space<vmem>>, %arg12: memref<1x32x64xf32, #tpu.memory_space<vmem>>, %arg13: memref<1x1x32xf32, #tpu.memory_space<vmem>>, %arg14: memref<32x16xf32, #tpu.memory_space<vmem>>, %arg15: memref<1x8x32xf32, #tpu.memory_space<vmem>>, %arg16: memref<1x32xf32, #tpu.memory_space<vmem>>, %arg17: memref<1x32xf32, #tpu.memory_space<vmem>>, %arg18: memref<1x32xf32, #tpu.memory_space<vmem>>, %arg19: memref<1x1xf32, #tpu.memory_space<vmem>>, %arg20: memref<128x32xf32, #tpu.memory_space<vmem>>, %arg21: memref<1x128xf32, #tpu.memory_space<vmem>>, %arg22: memref<2x128xf32, #tpu.memory_space<vmem>>, %arg23: memref<2x8x32xf32, #tpu.memory_space<vmem>>) attributes {dimension_semantics = [#tpu.dimension_semantics<parallel>, #tpu.dimension_semantics<arbitrary>], iteration_bounds = array<i64: 1, 2>, scalar_prefetch = 0 : i64, scratch_operands = 1 : i64, tpu.core_type = #tpu.core_type<tc>, window_params = [{transform_indices = @transform_0, window_bounds = array<i64: 2, 8, 16>}, {transform_indices = @transform_1, window_bounds = array<i64: 1, 1, 32>}, {transform_indices = @transform_2, window_bounds = array<i64: 1, 1, 32>}, {transform_indices = @transform_3, window_bounds = array<i64: 1, 96, 32>}, {transform_indices = @transform_4, window_bounds = array<i64: 1, 32, 32>}, {transform_indices = @transform_5, window_bounds = array<i64: 1, 1, 32>}, {transform_indices = @transform_6, window_bounds = array<i64: 1, 1, 32>}, {transform_indices = @transform_7, window_bounds = array<i64: 1, 1, 32>}, {transform_indices = @transform_8, window_bounds = array<i64: 1, 64, 32>}, {transform_indices = @transform_9, window_bounds = array<i64: 1, 1, 64>}, {transform_indices = @transform_10, window_bounds = array<i64: 1, 32, 64>}, {transform_indices = @transform_11, window_bounds = array<i64: 1, 1, 32>}, {pipeline_mode = #tpu.pipeline_mode<synchronous>, transform_indices = @transform_12, window_bounds = array<i64: 32, 16>}, {pipeline_mode = #tpu.pipeline_mode<synchronous>, transform_indices = @transform_13, window_bounds = array<i64: 1, 8, 32>}, {pipeline_mode = #tpu.pipeline_mode<synchronous>, transform_indices = @transform_14, window_bounds = array<i64: 1, 32>}, {pipeline_mode = #tpu.pipeline_mode<synchronous>, transform_indices = @transform_15, window_bounds = array<i64: 1, 32>}, {pipeline_mode = #tpu.pipeline_mode<synchronous>, transform_indices = @transform_16, window_bounds = array<i64: 1, 32>}, {pipeline_mode = #tpu.pipeline_mode<synchronous>, transform_indices = @transform_17, window_bounds = array<i64: 1, 1>}, {pipeline_mode = #tpu.pipeline_mode<synchronous>, transform_indices = @transform_18, window_bounds = array<i64: 128, 32>}, {pipeline_mode = #tpu.pipeline_mode<synchronous>, transform_indices = @transform_19, window_bounds = array<i64: 1, 128>}, {transform_indices = @transform_20, window_bounds = array<i64: 2, 128>}]} {
    %c0_i32 = arith.constant 0 : i32
    %0 = arith.cmpi eq, %arg1, %c0_i32 : i32
    %1 = arith.extui %0 : i1 to i32
    %c0_i32_0 = arith.constant 0 : i32
    %2 = arith.cmpi ne, %1, %c0_i32_0 : i32
    scf.if %2 {
      %c0_67 = arith.constant 0 : index
      %c0_68 = arith.constant 0 : index
      %c0_69 = arith.constant 0 : index
      %149 = vector.load %arg2[%c0_67, %c0_68, %c0_69] : memref<2x8x16xf32, #tpu.memory_space<vmem>>, vector<2x8x16xf32>
      %150 = vector.shape_cast %149 : vector<2x8x16xf32> to vector<16x16xf32>
      %c0_70 = arith.constant 0 : index
      %c0_71 = arith.constant 0 : index
      %151 = vector.load %arg14[%c0_70, %c0_71] : memref<32x16xf32, #tpu.memory_space<vmem>>, vector<32x16xf32>
      %cst_72 = arith.constant dense<0.000000e+00> : vector<16x32xf32>
      %152 = tpu.matmul %150, %151, %cst_72 {dimension_numbers = #tpu.dot_dimension_numbers<[1], [1], [0], [0], [0, 0, 1, 0], [], []>} : vector<16x16xf32>, vector<32x16xf32>, vector<16x32xf32> -> vector<16x32xf32>
      %153 = vector.shape_cast %152 : vector<16x32xf32> to vector<2x8x32xf32>
      %c0_73 = arith.constant 0 : index
      %c0_74 = arith.constant 0 : index
      %c0_75 = arith.constant 0 : index
      %154 = vector.load %arg15[%c0_73, %c0_74, %c0_75] : memref<1x8x32xf32, #tpu.memory_space<vmem>>, vector<1x8x32xf32>
      %155 = vector.broadcast %154 : vector<1x8x32xf32> to vector<2x8x32xf32>
      %156 = arith.addf %153, %155 : vector<2x8x32xf32>
      %c0_76 = arith.constant 0 : index
      %c0_77 = arith.constant 0 : index
      %c0_78 = arith.constant 0 : index
      %157 = vector.load %arg23[%c0_76, %c0_77, %c0_78] : memref<2x8x32xf32, #tpu.memory_space<vmem>>, vector<2x8x32xf32>
      tpu.vector_store %arg23[%c0_76, %c0_77, %c0_78], %156 {strides = array<i32>} : memref<2x8x32xf32, #tpu.memory_space<vmem>>, vector<2x8x32xf32>,
    } else {
    }
    %c0 = arith.constant 0 : index
    %c0_1 = arith.constant 0 : index
    %c0_2 = arith.constant 0 : index
    %3 = vector.load %arg23[%c0, %c0_1, %c0_2] : memref<2x8x32xf32, #tpu.memory_space<vmem>>, vector<2x8x32xf32>
    %c0_3 = arith.constant 0 : index
    %c0_4 = arith.constant 0 : index
    %c0_5 = arith.constant 0 : index
    %4 = vector.load %arg3[%c0_3, %c0_4, %c0_5] : memref<1x1x32xf32, #tpu.memory_space<vmem>>, vector<1x1x32xf32>
    %5 = vector.shape_cast %4 : vector<1x1x32xf32> to vector<1x32xf32>
    %c0_6 = arith.constant 0 : index
    %c0_7 = arith.constant 0 : index
    %c0_8 = arith.constant 0 : index
    %6 = vector.load %arg4[%c0_6, %c0_7, %c0_8] : memref<1x1x32xf32, #tpu.memory_space<vmem>>, vector<1x1x32xf32>
    %7 = vector.shape_cast %6 : vector<1x1x32xf32> to vector<1x32xf32>
    %cst = arith.constant dense<0.000000e+00> : vector<2x8xf32>
    %8 = vector.multi_reduction <add>, %3, %cst [2] : vector<2x8x32xf32> to vector<2x8xf32>
    %9 = vector.shape_cast %8 : vector<2x8xf32> to vector<2x8x1xf32>
    %cst_9 = arith.constant 3.200000e+01 : f32
    %10 = vector.broadcast %cst_9 : f32 to vector<2x8x1xf32>
    %11 = arith.divf %9, %10 : vector<2x8x1xf32>
    %12 = vector.broadcast %11 : vector<2x8x1xf32> to vector<2x8x32xf32>
    %13 = arith.subf %3, %12 : vector<2x8x32xf32>
    %14 = arith.mulf %13, %13 : vector<2x8x32xf32>
    %cst_10 = arith.constant dense<0.000000e+00> : vector<2x8xf32>
    %15 = vector.multi_reduction <add>, %14, %cst_10 [2] : vector<2x8x32xf32> to vector<2x8xf32>
    %16 = vector.shape_cast %15 : vector<2x8xf32> to vector<2x8x1xf32>
    %cst_11 = arith.constant 3.200000e+01 : f32
    %17 = vector.broadcast %cst_11 : f32 to vector<2x8x1xf32>
    %18 = arith.divf %16, %17 : vector<2x8x1xf32>
    %19 = vector.broadcast %11 : vector<2x8x1xf32> to vector<2x8x32xf32>
    %20 = arith.subf %3, %19 : vector<2x8x32xf32>
    %cst_12 = arith.constant 9.99999974E-6 : f32
    %21 = vector.broadcast %cst_12 : f32 to vector<2x8x1xf32>
    %22 = arith.addf %18, %21 : vector<2x8x1xf32>
    %23 = math.rsqrt %22 : vector<2x8x1xf32>
    %24 = vector.broadcast %23 : vector<2x8x1xf32> to vector<2x8x32xf32>
    %25 = arith.mulf %20, %24 : vector<2x8x32xf32>
    %26 = vector.shape_cast %5 : vector<1x32xf32> to vector<1x1x32xf32>
    %27 = vector.broadcast %26 : vector<1x1x32xf32> to vector<2x8x32xf32>
    %28 = arith.mulf %25, %27 : vector<2x8x32xf32>
    %29 = vector.shape_cast %7 : vector<1x32xf32> to vector<1x1x32xf32>
    %30 = vector.broadcast %29 : vector<1x1x32xf32> to vector<2x8x32xf32>
    %31 = arith.addf %28, %30 : vector<2x8x32xf32>
    %32 = vector.shape_cast %31 : vector<2x8x32xf32> to vector<16x32xf32>
    %c0_13 = arith.constant 0 : index
    %c0_14 = arith.constant 0 : index
    %c0_15 = arith.constant 0 : index
    %33 = vector.load %arg5[%c0_13, %c0_14, %c0_15] : memref<1x96x32xf32, #tpu.memory_space<vmem>>, vector<1x96x32xf32>
    %34 = vector.shape_cast %33 : vector<1x96x32xf32> to vector<96x32xf32>
    %cst_16 = arith.constant dense<0.000000e+00> : vector<16x96xf32>
    %35 = tpu.matmul %32, %34, %cst_16 {dimension_numbers = #tpu.dot_dimension_numbers<[1], [1], [0], [0], [0, 0, 1, 0], [], []>} : vector<16x32xf32>, vector<96x32xf32>, vector<16x96xf32> -> vector<16x96xf32>
    %36 = vector.extract_strided_slice %35 {offsets = [0, 0], sizes = [16, 16], strides = [1, 1]} : vector<16x96xf32> to vector<16x16xf32>
    %37 = vector.shape_cast %36 : vector<16x16xf32> to vector<2x8x16xf32>
    %38 = vector.extract_strided_slice %35 {offsets = [0, 32], sizes = [16, 16], strides = [1, 1]} : vector<16x96xf32> to vector<16x16xf32>
    %39 = vector.shape_cast %38 : vector<16x16xf32> to vector<2x8x16xf32>
    %40 = vector.extract_strided_slice %35 {offsets = [0, 64], sizes = [16, 16], strides = [1, 1]} : vector<16x96xf32> to vector<16x16xf32>
    %41 = vector.shape_cast %40 : vector<16x16xf32> to vector<2x8x16xf32>
    "tpu.trace_start"() <{level = 10 : i32, message = "bqd,bkd->bqk"}> : () -> ()
    %cst_17 = arith.constant dense<0.000000e+00> : vector<2x8x8xf32>
    %42 = tpu.matmul %37, %39, %cst_17 {dimension_numbers = #tpu.dot_dimension_numbers<[2], [2], [1], [1], [0, 0, 0, 1, 1, 1], [0], [0]>} : vector<2x8x16xf32>, vector<2x8x16xf32>, vector<2x8x8xf32> -> vector<2x8x8xf32>
    "tpu.trace_stop"() : () -> ()
    %cst_18 = arith.constant 0.176776692 : f32
    %43 = vector.broadcast %cst_18 : f32 to vector<2x8x8xf32>
    %44 = arith.mulf %42, %43 : vector<2x8x8xf32>
    %cst_19 = arith.constant dense<0xFF800000> : vector<2x8xf32>
    %45 = vector.multi_reduction <maximumf>, %44, %cst_19 [2] : vector<2x8x8xf32> to vector<2x8xf32>
    %46 = vector.shape_cast %45 : vector<2x8xf32> to vector<2x8x1xf32>
    %47 = vector.broadcast %46 : vector<2x8x1xf32> to vector<2x8x8xf32>
    %48 = arith.subf %44, %47 : vector<2x8x8xf32>
    %49 = math.exp %48 : vector<2x8x8xf32>
    %cst_20 = arith.constant dense<0.000000e+00> : vector<2x8xf32>
    %50 = vector.multi_reduction <add>, %49, %cst_20 [2] : vector<2x8x8xf32> to vector<2x8xf32>
    %51 = vector.shape_cast %50 : vector<2x8xf32> to vector<2x8x1xf32>
    %52 = tpu.reciprocal %51 {approx = true} : vector<2x8x1xf32> -> vector<2x8x1xf32>
    %53 = vector.broadcast %52 : vector<2x8x1xf32> to vector<2x8x8xf32>
    %54 = arith.mulf %49, %53 : vector<2x8x8xf32>
    "tpu.trace_start"() <{level = 10 : i32, message = "bqk,bkd->bqd"}> : () -> ()
    %cst_21 = arith.constant dense<0.000000e+00> : vector<2x8x16xf32>
    %55 = tpu.matmul %54, %41, %cst_21 {dimension_numbers = #tpu.dot_dimension_numbers<[2], [1], [1], [2], [0, 0, 0, 1, 1, 2], [0], [0]>} : vector<2x8x8xf32>, vector<2x8x16xf32>, vector<2x8x16xf32> -> vector<2x8x16xf32>
    "tpu.trace_stop"() : () -> ()
    %56 = vector.extract_strided_slice %35 {offsets = [0, 16], sizes = [16, 16], strides = [1, 1]} : vector<16x96xf32> to vector<16x16xf32>
    %57 = vector.shape_cast %56 : vector<16x16xf32> to vector<2x8x16xf32>
    %58 = vector.extract_strided_slice %35 {offsets = [0, 48], sizes = [16, 16], strides = [1, 1]} : vector<16x96xf32> to vector<16x16xf32>
    %59 = vector.shape_cast %58 : vector<16x16xf32> to vector<2x8x16xf32>
    %60 = vector.extract_strided_slice %35 {offsets = [0, 80], sizes = [16, 16], strides = [1, 1]} : vector<16x96xf32> to vector<16x16xf32>
    %61 = vector.shape_cast %60 : vector<16x16xf32> to vector<2x8x16xf32>
    "tpu.trace_start"() <{level = 10 : i32, message = "bqd,bkd->bqk"}> : () -> ()
    %cst_22 = arith.constant dense<0.000000e+00> : vector<2x8x8xf32>
    %62 = tpu.matmul %57, %59, %cst_22 {dimension_numbers = #tpu.dot_dimension_numbers<[2], [2], [1], [1], [0, 0, 0, 1, 1, 1], [0], [0]>} : vector<2x8x16xf32>, vector<2x8x16xf32>, vector<2x8x8xf32> -> vector<2x8x8xf32>
    "tpu.trace_stop"() : () -> ()
    %cst_23 = arith.constant 0.176776692 : f32
    %63 = vector.broadcast %cst_23 : f32 to vector<2x8x8xf32>
    %64 = arith.mulf %62, %63 : vector<2x8x8xf32>
    %cst_24 = arith.constant dense<0xFF800000> : vector<2x8xf32>
    %65 = vector.multi_reduction <maximumf>, %64, %cst_24 [2] : vector<2x8x8xf32> to vector<2x8xf32>
    %66 = vector.shape_cast %65 : vector<2x8xf32> to vector<2x8x1xf32>
    %67 = vector.broadcast %66 : vector<2x8x1xf32> to vector<2x8x8xf32>
    %68 = arith.subf %64, %67 : vector<2x8x8xf32>
    %69 = math.exp %68 : vector<2x8x8xf32>
    %cst_25 = arith.constant dense<0.000000e+00> : vector<2x8xf32>
    %70 = vector.multi_reduction <add>, %69, %cst_25 [2] : vector<2x8x8xf32> to vector<2x8xf32>
    %71 = vector.shape_cast %70 : vector<2x8xf32> to vector<2x8x1xf32>
    %72 = tpu.reciprocal %71 {approx = true} : vector<2x8x1xf32> -> vector<2x8x1xf32>
    %73 = vector.broadcast %72 : vector<2x8x1xf32> to vector<2x8x8xf32>
    %74 = arith.mulf %69, %73 : vector<2x8x8xf32>
    "tpu.trace_start"() <{level = 10 : i32, message = "bqk,bkd->bqd"}> : () -> ()
    %cst_26 = arith.constant dense<0.000000e+00> : vector<2x8x16xf32>
    %75 = tpu.matmul %74, %61, %cst_26 {dimension_numbers = #tpu.dot_dimension_numbers<[2], [1], [1], [2], [0, 0, 0, 1, 1, 2], [0], [0]>} : vector<2x8x8xf32>, vector<2x8x16xf32>, vector<2x8x16xf32> -> vector<2x8x16xf32>
    "tpu.trace_stop"() : () -> ()
    %76 = tpu.concatenate %55, %75 in 2 : vector<2x8x16xf32>, vector<2x8x16xf32> -> vector<2x8x32xf32>
    %77 = vector.shape_cast %76 : vector<2x8x32xf32> to vector<16x32xf32>
    %c0_27 = arith.constant 0 : index
    %c0_28 = arith.constant 0 : index
    %c0_29 = arith.constant 0 : index
    %78 = vector.load %arg6[%c0_27, %c0_28, %c0_29] : memref<1x32x32xf32, #tpu.memory_space<vmem>>, vector<1x32x32xf32>
    %79 = vector.shape_cast %78 : vector<1x32x32xf32> to vector<32x32xf32>
    %cst_30 = arith.constant dense<0.000000e+00> : vector<16x32xf32>
    %80 = tpu.matmul %77, %79, %cst_30 {dimension_numbers = #tpu.dot_dimension_numbers<[1], [1], [0], [0], [0, 0, 1, 0], [], []>} : vector<16x32xf32>, vector<32x32xf32>, vector<16x32xf32> -> vector<16x32xf32>
    %c0_31 = arith.constant 0 : index
    %c0_32 = arith.constant 0 : index
    %c0_33 = arith.constant 0 : index
    %81 = vector.load %arg7[%c0_31, %c0_32, %c0_33] : memref<1x1x32xf32, #tpu.memory_space<vmem>>, vector<1x1x32xf32>
    %82 = vector.shape_cast %81 : vector<1x1x32xf32> to vector<1x32xf32>
    %83 = vector.broadcast %82 : vector<1x32xf32> to vector<16x32xf32>
    %84 = arith.addf %80, %83 : vector<16x32xf32>
    %85 = vector.shape_cast %84 : vector<16x32xf32> to vector<2x8x32xf32>
    %86 = arith.addf %3, %85 : vector<2x8x32xf32>
    %c0_34 = arith.constant 0 : index
    %c0_35 = arith.constant 0 : index
    %c0_36 = arith.constant 0 : index
    %87 = vector.load %arg8[%c0_34, %c0_35, %c0_36] : memref<1x1x32xf32, #tpu.memory_space<vmem>>, vector<1x1x32xf32>
    %88 = vector.shape_cast %87 : vector<1x1x32xf32> to vector<1x32xf32>
    %c0_37 = arith.constant 0 : index
    %c0_38 = arith.constant 0 : index
    %c0_39 = arith.constant 0 : index
    %89 = vector.load %arg9[%c0_37, %c0_38, %c0_39] : memref<1x1x32xf32, #tpu.memory_space<vmem>>, vector<1x1x32xf32>
    %90 = vector.shape_cast %89 : vector<1x1x32xf32> to vector<1x32xf32>
    %cst_40 = arith.constant dense<0.000000e+00> : vector<2x8xf32>
    %91 = vector.multi_reduction <add>, %86, %cst_40 [2] : vector<2x8x32xf32> to vector<2x8xf32>
    %92 = vector.shape_cast %91 : vector<2x8xf32> to vector<2x8x1xf32>
    %cst_41 = arith.constant 3.200000e+01 : f32
    %93 = vector.broadcast %cst_41 : f32 to vector<2x8x1xf32>
    %94 = arith.divf %92, %93 : vector<2x8x1xf32>
    %95 = vector.broadcast %94 : vector<2x8x1xf32> to vector<2x8x32xf32>
    %96 = arith.subf %86, %95 : vector<2x8x32xf32>
    %97 = arith.mulf %96, %96 : vector<2x8x32xf32>
    %cst_42 = arith.constant dense<0.000000e+00> : vector<2x8xf32>
    %98 = vector.multi_reduction <add>, %97, %cst_42 [2] : vector<2x8x32xf32> to vector<2x8xf32>
    %99 = vector.shape_cast %98 : vector<2x8xf32> to vector<2x8x1xf32>
    %cst_43 = arith.constant 3.200000e+01 : f32
    %100 = vector.broadcast %cst_43 : f32 to vector<2x8x1xf32>
    %101 = arith.divf %99, %100 : vector<2x8x1xf32>
    %102 = vector.broadcast %94 : vector<2x8x1xf32> to vector<2x8x32xf32>
    %103 = arith.subf %86, %102 : vector<2x8x32xf32>
    %cst_44 = arith.constant 9.99999974E-6 : f32
    %104 = vector.broadcast %cst_44 : f32 to vector<2x8x1xf32>
    %105 = arith.addf %101, %104 : vector<2x8x1xf32>
    %106 = math.rsqrt %105 : vector<2x8x1xf32>
    %107 = vector.broadcast %106 : vector<2x8x1xf32> to vector<2x8x32xf32>
    %108 = arith.mulf %103, %107 : vector<2x8x32xf32>
    %109 = vector.shape_cast %88 : vector<1x32xf32> to vector<1x1x32xf32>
    %110 = vector.broadcast %109 : vector<1x1x32xf32> to vector<2x8x32xf32>
    %111 = arith.mulf %108, %110 : vector<2x8x32xf32>
    %112 = vector.shape_cast %90 : vector<1x32xf32> to vector<1x1x32xf32>
    %113 = vector.broadcast %112 : vector<1x1x32xf32> to vector<2x8x32xf32>
    %114 = arith.addf %111, %113 : vector<2x8x32xf32>
    %115 = vector.shape_cast %114 : vector<2x8x32xf32> to vector<16x32xf32>
    %c0_45 = arith.constant 0 : index
    %c0_46 = arith.constant 0 : index
    %c0_47 = arith.constant 0 : index
    %116 = vector.load %arg10[%c0_45, %c0_46, %c0_47] : memref<1x64x32xf32, #tpu.memory_space<vmem>>, vector<1x64x32xf32>
    %117 = vector.shape_cast %116 : vector<1x64x32xf32> to vector<64x32xf32>
    %cst_48 = arith.constant dense<0.000000e+00> : vector<16x64xf32>
    %118 = tpu.matmul %115, %117, %cst_48 {dimension_numbers = #tpu.dot_dimension_numbers<[1], [1], [0], [0], [0, 0, 1, 0], [], []>} : vector<16x32xf32>, vector<64x32xf32>, vector<16x64xf32> -> vector<16x64xf32>
    %c0_49 = arith.constant 0 : index
    %c0_50 = arith.constant 0 : index
    %c0_51 = arith.constant 0 : index
    %119 = vector.load %arg11[%c0_49, %c0_50, %c0_51] : memref<1x1x64xf32, #tpu.memory_space<vmem>>, vector<1x1x64xf32>
    %120 = vector.shape_cast %119 : vector<1x1x64xf32> to vector<1x64xf32>
    %121 = vector.broadcast %120 : vector<1x64xf32> to vector<16x64xf32>
    %122 = arith.addf %118, %121 : vector<16x64xf32>
    %cst_52 = arith.constant 5.000000e-01 : f32
    %123 = vector.broadcast %cst_52 : f32 to vector<16x64xf32>
    %124 = arith.mulf %123, %122 : vector<16x64xf32>
    %cst_53 = arith.constant 4.471500e-02 : f32
    %125 = vector.broadcast %cst_53 : f32 to vector<16x64xf32>
    %126 = arith.mulf %125, %122 : vector<16x64xf32>
    %127 = arith.mulf %126, %122 : vector<16x64xf32>
    %128 = arith.mulf %127, %122 : vector<16x64xf32>
    %129 = arith.addf %122, %128 : vector<16x64xf32>
    %cst_54 = arith.constant 0.797884583 : f32
    %130 = vector.broadcast %cst_54 : f32 to vector<16x64xf32>
    %131 = arith.mulf %130, %129 : vector<16x64xf32>
    %132 = math.tanh %131 : vector<16x64xf32>
    %cst_55 = arith.constant 1.000000e+00 : f32
    %133 = vector.broadcast %cst_55 : f32 to vector<16x64xf32>
    %134 = arith.addf %133, %132 : vector<16x64xf32>
    %135 = arith.mulf %124, %134 : vector<16x64xf32>
    %c0_56 = arith.constant 0 : index
    %c0_57 = arith.constant 0 : index
    %c0_58 = arith.constant 0 : index
    %136 = vector.load %arg12[%c0_56, %c0_57, %c0_58] : memref<1x32x64xf32, #tpu.memory_space<vmem>>, vector<1x32x64xf32>
    %137 = vector.shape_cast %136 : vector<1x32x64xf32> to vector<32x64xf32>
    %cst_59 = arith.constant dense<0.000000e+00> : vector<16x32xf32>
    %138 = tpu.matmul %135, %137, %cst_59 {dimension_numbers = #tpu.dot_dimension_numbers<[1], [1], [0], [0], [0, 0, 1, 0], [], []>} : vector<16x64xf32>, vector<32x64xf32>, vector<16x32xf32> -> vector<16x32xf32>
    %c0_60 = arith.constant 0 : index
    %c0_61 = arith.constant 0 : index
    %c0_62 = arith.constant 0 : index
    %139 = vector.load %arg13[%c0_60, %c0_61, %c0_62] : memref<1x1x32xf32, #tpu.memory_space<vmem>>, vector<1x1x32xf32>
    %140 = vector.shape_cast %139 : vector<1x1x32xf32> to vector<1x32xf32>
    %141 = vector.broadcast %140 : vector<1x32xf32> to vector<16x32xf32>
    %142 = arith.addf %138, %141 : vector<16x32xf32>
    %143 = vector.shape_cast %142 : vector<16x32xf32> to vector<2x8x32xf32>
    %144 = arith.addf %86, %143 : vector<2x8x32xf32>
    %c0_63 = arith.constant 0 : index
    %c0_64 = arith.constant 0 : index
    %c0_65 = arith.constant 0 : index
    %145 = vector.load %arg23[%c0_63, %c0_64, %c0_65] : memref<2x8x32xf32, #tpu.memory_space<vmem>>, vector<2x8x32xf32>
    tpu.vector_store %arg23[%c0_63, %c0_64, %c0_65], %144 {strides = array<i32>} : memref<2x8x32xf32, #tpu.memory_space<vmem>>, vector<2x8x32xf32>,
    %c1_i32 = arith.constant 1 : i32
    %146 = arith.cmpi eq, %arg1, %c1_i32 : i32
    %147 = arith.extui %146 : i1 to i32
    %c0_i32_66 = arith.constant 0 : i32
    %148 = arith.cmpi ne, %147, %c0_i32_66 : i32
    scf.if %148 {
      %c0_67 = arith.constant 0 : index
      %c0_68 = arith.constant 0 : index
      %149 = vector.load %arg16[%c0_67, %c0_68] : memref<1x32xf32, #tpu.memory_space<vmem>>, vector<1x32xf32>
      %c0_69 = arith.constant 0 : index
      %c0_70 = arith.constant 0 : index
      %150 = vector.load %arg17[%c0_69, %c0_70] : memref<1x32xf32, #tpu.memory_space<vmem>>, vector<1x32xf32>
      %cst_71 = arith.constant dense<0.000000e+00> : vector<2x8xf32>
      %151 = vector.multi_reduction <add>, %144, %cst_71 [2] : vector<2x8x32xf32> to vector<2x8xf32>
      %152 = vector.shape_cast %151 : vector<2x8xf32> to vector<2x8x1xf32>
      %cst_72 = arith.constant 3.200000e+01 : f32
      %153 = vector.broadcast %cst_72 : f32 to vector<2x8x1xf32>
      %154 = arith.divf %152, %153 : vector<2x8x1xf32>
      %155 = vector.broadcast %154 : vector<2x8x1xf32> to vector<2x8x32xf32>
      %156 = arith.subf %144, %155 : vector<2x8x32xf32>
      %157 = arith.mulf %156, %156 : vector<2x8x32xf32>
      %cst_73 = arith.constant dense<0.000000e+00> : vector<2x8xf32>
      %158 = vector.multi_reduction <add>, %157, %cst_73 [2] : vector<2x8x32xf32> to vector<2x8xf32>
      %159 = vector.shape_cast %158 : vector<2x8xf32> to vector<2x8x1xf32>
      %cst_74 = arith.constant 3.200000e+01 : f32
      %160 = vector.broadcast %cst_74 : f32 to vector<2x8x1xf32>
      %161 = arith.divf %159, %160 : vector<2x8x1xf32>
      %162 = vector.broadcast %154 : vector<2x8x1xf32> to vector<2x8x32xf32>
      %163 = arith.subf %144, %162 : vector<2x8x32xf32>
      %cst_75 = arith.constant 9.99999974E-6 : f32
      %164 = vector.broadcast %cst_75 : f32 to vector<2x8x1xf32>
      %165 = arith.addf %161, %164 : vector<2x8x1xf32>
      %166 = math.rsqrt %165 : vector<2x8x1xf32>
      %167 = vector.broadcast %166 : vector<2x8x1xf32> to vector<2x8x32xf32>
      %168 = arith.mulf %163, %167 : vector<2x8x32xf32>
      %169 = vector.shape_cast %149 : vector<1x32xf32> to vector<1x1x32xf32>
      %170 = vector.broadcast %169 : vector<1x1x32xf32> to vector<2x8x32xf32>
      %171 = arith.mulf %168, %170 : vector<2x8x32xf32>
      %172 = vector.shape_cast %150 : vector<1x32xf32> to vector<1x1x32xf32>
      %173 = vector.broadcast %172 : vector<1x1x32xf32> to vector<2x8x32xf32>
      %174 = arith.addf %171, %173 : vector<2x8x32xf32>
      %c0_76 = arith.constant 0 : index
      %c0_77 = arith.constant 0 : index
      %175 = vector.load %arg18[%c0_76, %c0_77] : memref<1x32xf32, #tpu.memory_space<vmem>>, vector<1x32xf32>
      %176 = vector.shape_cast %175 : vector<1x32xf32> to vector<1x1x32xf32>
      %177 = vector.broadcast %176 : vector<1x1x32xf32> to vector<2x8x32xf32>
      %178 = arith.mulf %174, %177 : vector<2x8x32xf32>
      %cst_78 = arith.constant dense<0.000000e+00> : vector<2x8xf32>
      %179 = vector.multi_reduction <add>, %178, %cst_78 [2] : vector<2x8x32xf32> to vector<2x8xf32>
      %180 = vector.shape_cast %179 : vector<2x8xf32> to vector<2x8x1xf32>
      %c0_79 = arith.constant 0 : index
      %c0_80 = arith.constant 0 : index
      %181 = vector.load %arg19[%c0_79, %c0_80] : memref<1x1xf32, #tpu.memory_space<vmem>>, vector<1x1xf32>
      %182 = vector.shape_cast %181 : vector<1x1xf32> to vector<1x1x1xf32>
      %183 = vector.broadcast %182 : vector<1x1x1xf32> to vector<2x8x1xf32>
      %184 = arith.addf %180, %183 : vector<2x8x1xf32>
      %cst_81 = arith.constant dense<0xFF800000> : vector<2x1xf32>
      %185 = vector.multi_reduction <maximumf>, %184, %cst_81 [1] : vector<2x8x1xf32> to vector<2x1xf32>
      %186 = vector.shape_cast %185 : vector<2x1xf32> to vector<2x1x1xf32>
      %187 = vector.broadcast %186 : vector<2x1x1xf32> to vector<2x8x1xf32>
      %188 = arith.subf %184, %187 : vector<2x8x1xf32>
      %189 = math.exp %188 : vector<2x8x1xf32>
      %cst_82 = arith.constant dense<0.000000e+00> : vector<2x1xf32>
      %190 = vector.multi_reduction <add>, %189, %cst_82 [1] : vector<2x8x1xf32> to vector<2x1xf32>
      %191 = vector.shape_cast %190 : vector<2x1xf32> to vector<2x1x1xf32>
      %192 = tpu.reciprocal %191 {approx = true} : vector<2x1x1xf32> -> vector<2x1x1xf32>
      %193 = vector.broadcast %192 : vector<2x1x1xf32> to vector<2x8x1xf32>
      %194 = arith.mulf %189, %193 : vector<2x8x1xf32>
      %195 = vector.broadcast %194 : vector<2x8x1xf32> to vector<2x8x32xf32>
      %196 = arith.mulf %174, %195 : vector<2x8x32xf32>
      %cst_83 = arith.constant dense<0.000000e+00> : vector<2x32xf32>
      %197 = vector.multi_reduction <add>, %196, %cst_83 [1] : vector<2x8x32xf32> to vector<2x32xf32>
      %c0_84 = arith.constant 0 : index
      %c0_85 = arith.constant 0 : index
      %198 = vector.load %arg20[%c0_84, %c0_85] : memref<128x32xf32, #tpu.memory_space<vmem>>, vector<128x32xf32>
      %cst_86 = arith.constant dense<0.000000e+00> : vector<2x128xf32>
      %199 = tpu.matmul %197, %198, %cst_86 {dimension_numbers = #tpu.dot_dimension_numbers<[1], [1], [0], [0], [0, 0, 1, 0], [], []>} : vector<2x32xf32>, vector<128x32xf32>, vector<2x128xf32> -> vector<2x128xf32>
      %c0_87 = arith.constant 0 : index
      %c0_88 = arith.constant 0 : index
      %200 = vector.load %arg21[%c0_87, %c0_88] : memref<1x128xf32, #tpu.memory_space<vmem>>, vector<1x128xf32>
      %201 = vector.broadcast %200 : vector<1x128xf32> to vector<2x128xf32>
      %202 = arith.addf %199, %201 : vector<2x128xf32>
      %c0_89 = arith.constant 0 : index
      %c0_90 = arith.constant 0 : index
      %203 = vector.load %arg22[%c0_89, %c0_90] : memref<2x128xf32, #tpu.memory_space<vmem>>, vector<2x128xf32>
      tpu.vector_store %arg22[%c0_89, %c0_90], %202 {strides = array<i32>} : memref<2x128xf32, #tpu.memory_space<vmem>>, vector<2x128xf32>,
    } else {
    }
    return
  }
  func.func @transform_0(%arg0: i32, %arg1: i32) -> (i32, i32, i32) {
    %c0_i32 = arith.constant 0 : i32
    %c0_i32_0 = arith.constant 0 : i32
    %c0_i32_1 = arith.constant 0 : i32
    return %arg0, %c0_i32, %c0_i32_0 : i32, i32, i32
  }
  func.func @transform_1(%arg0: i32, %arg1: i32) -> (i32, i32, i32) {
    %c0_i32 = arith.constant 0 : i32
    %c0_i32_0 = arith.constant 0 : i32
    %c0_i32_1 = arith.constant 0 : i32
    return %arg1, %c0_i32, %c0_i32_0 : i32, i32, i32
  }
  func.func @transform_2(%arg0: i32, %arg1: i32) -> (i32, i32, i32) {
    %c0_i32 = arith.constant 0 : i32
    %c0_i32_0 = arith.constant 0 : i32
    %c0_i32_1 = arith.constant 0 : i32
    return %arg1, %c0_i32, %c0_i32_0 : i32, i32, i32
  }
  func.func @transform_3(%arg0: i32, %arg1: i32) -> (i32, i32, i32) {
    %c0_i32 = arith.constant 0 : i32
    %c0_i32_0 = arith.constant 0 : i32
    %c0_i32_1 = arith.constant 0 : i32
    return %arg1, %c0_i32, %c0_i32_0 : i32, i32, i32
  }
  func.func @transform_4(%arg0: i32, %arg1: i32) -> (i32, i32, i32) {
    %c0_i32 = arith.constant 0 : i32
    %c0_i32_0 = arith.constant 0 : i32
    %c0_i32_1 = arith.constant 0 : i32
    return %arg1, %c0_i32, %c0_i32_0 : i32, i32, i32
  }
  func.func @transform_5(%arg0: i32, %arg1: i32) -> (i32, i32, i32) {
    %c0_i32 = arith.constant 0 : i32
    %c0_i32_0 = arith.constant 0 : i32
    %c0_i32_1 = arith.constant 0 : i32
    return %arg1, %c0_i32, %c0_i32_0 : i32, i32, i32
  }
  func.func @transform_6(%arg0: i32, %arg1: i32) -> (i32, i32, i32) {
    %c0_i32 = arith.constant 0 : i32
    %c0_i32_0 = arith.constant 0 : i32
    %c0_i32_1 = arith.constant 0 : i32
    return %arg1, %c0_i32, %c0_i32_0 : i32, i32, i32
  }
  func.func @transform_7(%arg0: i32, %arg1: i32) -> (i32, i32, i32) {
    %c0_i32 = arith.constant 0 : i32
    %c0_i32_0 = arith.constant 0 : i32
    %c0_i32_1 = arith.constant 0 : i32
    return %arg1, %c0_i32, %c0_i32_0 : i32, i32, i32
  }
  func.func @transform_8(%arg0: i32, %arg1: i32) -> (i32, i32, i32) {
    %c0_i32 = arith.constant 0 : i32
    %c0_i32_0 = arith.constant 0 : i32
    %c0_i32_1 = arith.constant 0 : i32
    return %arg1, %c0_i32, %c0_i32_0 : i32, i32, i32
  }
  func.func @transform_9(%arg0: i32, %arg1: i32) -> (i32, i32, i32) {
    %c0_i32 = arith.constant 0 : i32
    %c0_i32_0 = arith.constant 0 : i32
    %c0_i32_1 = arith.constant 0 : i32
    return %arg1, %c0_i32, %c0_i32_0 : i32, i32, i32
  }
  func.func @transform_10(%arg0: i32, %arg1: i32) -> (i32, i32, i32) {
    %c0_i32 = arith.constant 0 : i32
    %c0_i32_0 = arith.constant 0 : i32
    %c0_i32_1 = arith.constant 0 : i32
    return %arg1, %c0_i32, %c0_i32_0 : i32, i32, i32
  }
  func.func @transform_11(%arg0: i32, %arg1: i32) -> (i32, i32, i32) {
    %c0_i32 = arith.constant 0 : i32
    %c0_i32_0 = arith.constant 0 : i32
    %c0_i32_1 = arith.constant 0 : i32
    return %arg1, %c0_i32, %c0_i32_0 : i32, i32, i32
  }
  func.func @transform_12(%arg0: i32, %arg1: i32) -> (i32, i32) {
    %c0_i32 = arith.constant 0 : i32
    %c0_i32_0 = arith.constant 0 : i32
    %c0_i32_1 = arith.constant 0 : i32
    return %c0_i32, %c0_i32_0 : i32, i32
  }
  func.func @transform_13(%arg0: i32, %arg1: i32) -> (i32, i32, i32) {
    %c0_i32 = arith.constant 0 : i32
    %c0_i32_0 = arith.constant 0 : i32
    %c0_i32_1 = arith.constant 0 : i32
    %c0_i32_2 = arith.constant 0 : i32
    return %c0_i32, %c0_i32_0, %c0_i32_1 : i32, i32, i32
  }
  func.func @transform_14(%arg0: i32, %arg1: i32) -> (i32, i32) {
    %c0_i32 = arith.constant 0 : i32
    %c0_i32_0 = arith.constant 0 : i32
    %c0_i32_1 = arith.constant 0 : i32
    return %c0_i32, %c0_i32_0 : i32, i32
  }
  func.func @transform_15(%arg0: i32, %arg1: i32) -> (i32, i32) {
    %c0_i32 = arith.constant 0 : i32
    %c0_i32_0 = arith.constant 0 : i32
    %c0_i32_1 = arith.constant 0 : i32
    return %c0_i32, %c0_i32_0 : i32, i32
  }
  func.func @transform_16(%arg0: i32, %arg1: i32) -> (i32, i32) {
    %c0_i32 = arith.constant 0 : i32
    %c0_i32_0 = arith.constant 0 : i32
    %c0_i32_1 = arith.constant 0 : i32
    return %c0_i32, %c0_i32_0 : i32, i32
  }
  func.func @transform_17(%arg0: i32, %arg1: i32) -> (i32, i32) {
    %c0_i32 = arith.constant 0 : i32
    %c0_i32_0 = arith.constant 0 : i32
    %c0_i32_1 = arith.constant 0 : i32
    return %c0_i32, %c0_i32_0 : i32, i32
  }
  func.func @transform_18(%arg0: i32, %arg1: i32) -> (i32, i32) {
    %c0_i32 = arith.constant 0 : i32
    %c0_i32_0 = arith.constant 0 : i32
    %c0_i32_1 = arith.constant 0 : i32
    return %c0_i32, %c0_i32_0 : i32, i32
  }
  func.func @transform_19(%arg0: i32, %arg1: i32) -> (i32, i32) {
    %c0_i32 = arith.constant 0 : i32
    %c0_i32_0 = arith.constant 0 : i32
    %c0_i32_1 = arith.constant 0 : i32
    return %c0_i32, %c0_i32_0 : i32, i32
  }
  func.func @transform_20(%arg0: i32, %arg1: i32) -> (i32, i32) {
    %c0_i32 = arith.constant 0 : i32
    %c0_i32_0 = arith.constant 0 : i32
    return %arg0, %c0_i32 : i32, i32
  }
}

</mosaic_0001>

<bundles_post_ra>
// kernel: tpu_custom_call.1
= control target key start
LH: loop header
LB: loop body
LE: loop exit
PB: predicated region body
PF: predicated region fallthrough
CT: control target
= control target key end

     0   :  { %s3819_s0 = inlined_call_operand.vmem [shape: f32[2,8,16], index: 0, kind: input, shape index: {}]   ;;  %s3820_s1 = inlined_call_operand.vmem [shape: f32[2,1,32], index: 1, kind: input, shape index: {}]   ;;  %s3821_s2 = inlined_call_operand.vmem [shape: f32[2,1,32], index: 2, kind: input, shape index: {}]   ;;  %s3822_s3 = inlined_call_operand.vmem [shape: f32[2,96,32], index: 3, kind: input, shape index: {}]   ;;  %s3823_s4 = inlined_call_operand.vmem [shape: f32[2,32,32], index: 4, kind: input, shape index: {}]   ;;  %s3824_s5 = inlined_call_operand.vmem [shape: f32[2,1,32], index: 5, kind: input, shape index: {}]   ;;  %s3825_s6 = inlined_call_operand.vmem [shape: f32[2,1,32], index: 6, kind: input, shape index: {}]   ;;  %s3826_s7 = inlined_call_operand.vmem [shape: f32[2,1,32], index: 7, kind: input, shape index: {}]   ;;  %s3827_s8 = inlined_call_operand.vmem [shape: f32[2,64,32], index: 8, kind: input, shape index: {}]   ;;  %s3828_s9 = inlined_call_operand.vmem [shape: f32[2,1,64], index: 9, kind: input, shape index: {}]   ;;  %s3829_s10 = inlined_call_operand.vmem [shape: f32[2,32,64], index: 10, kind: input, shape index: {}]   ;;  %s3830_s11 = inlined_call_operand.vmem [shape: f32[2,1,32], index: 11, kind: input, shape index: {}]   ;;  %s3831_s12 = inlined_call_operand.vmem [shape: f32[32,16], index: 12, kind: input, shape index: {}]   ;;  %s3832_s13 = inlined_call_operand.vmem [shape: f32[1,8,32], index: 13, kind: input, shape index: {}]   ;;  %s3833_s14 = inlined_call_operand.vmem [shape: f32[1,32], index: 14, kind: input, shape index: {}]   ;;  %s3834_s15 = inlined_call_operand.vmem [shape: f32[1,32], index: 15, kind: input, shape index: {}]   ;;  %s3835_s16 = inlined_call_operand.vmem [shape: f32[1,32], index: 16, kind: input, shape index: {}]   ;;  %s3836_s17 = inlined_call_operand.<no memory space> [shape: f32[1,1], index: 17, kind: input, shape index: {}]   ;;  %s3837_s18 = inlined_call_operand.vmem [shape: f32[128,32], index: 18, kind: input, shape index: {}]   ;;  %s3838_s19 = inlined_call_operand.vmem [shape: f32[1,128], index: 19, kind: input, shape index: {}]   ;;  %s3839_s20 = inlined_call_operand.hbm [shape: f32[2,128], index: 20, kind: output, shape index: {}]  }
   0x1   :  { %3845 = sst [smem:[#allocation10_spill]] %s3819_s0  ;;  %v25_v0 = vstv %s3836_s17 }
   0x2   :  { %3846 = sst [smem:[#allocation11_spill]] %s3820_s1  ;;  %26 = vst [vmem:[#allocation3] sm:$0x1] %v25_v0 }
   0x3   :  { %3847 = sst [smem:[#allocation12_spill]] %s3821_s2 }
   0x4   :  { %3848 = sst [smem:[#allocation13_spill]] %s3822_s3 }
   0x5   :  { %3849 = sst [smem:[#allocation14_spill]] %s3823_s4 }
   0x6   :  { %3850 = sst [smem:[#allocation15_spill]] %s3833_s14 }
   0x7   :  { %3851 = sst [smem:[#allocation16_spill]] %s3834_s15 }
   0x8   :  { %3852 = sst [smem:[#allocation17_spill]] %s3835_s16 }
   0x9   :  { %3853 = sst [smem:[#allocation18_spill]] %s3837_s18 }
   0xa   :  { %3854 = sst [smem:[#allocation19_spill]] %s3838_s19 }
   0xb   :  { %3855 = sst [smem:[#allocation20_spill]] %s3839_s20 }
   0xc   :  { %27 = vsyncpa [#allocation5], 0  ;;  %s3353_s23 = smov 0   ;;  %s3355_s24 = smov 0  }
   0xd   :  { %s3357_s2 = smov 0  }
   0xe LB: > { %3856 = sst [smem:[#allocation7_spill]] %s3226_s24  ;;  %s42_s25 = sadd.s32 1, %s3226_s24  ;;  %s3230_s2 = sphi %s3357_s2, %s33_s2   ;;  %s3226_s24 = sphi %s3355_s24, %s3882_s24   ;;  %s3222_s23 = sphi %s3353_s23, %s3881_s23  }
   0xf   : > { %3857 = sst [smem:[#allocation8_spill]] %s3230_s2  ;;  %p43_p0 = scmp.ge.s32.totalorder %s42_s25, 2 }
  0x10   : > { %p2635_p1 = scmp.ge.s32.totalorder %s3230_s2, 1  ;;  %p674_p2 = scmp.lt.s32.totalorder %s3230_s2, 3 }
  0x11   : > { %s3884_s25 = smov (%p43_p0, %s42_s25), 0 }
  0x12   : > { %3858 = sst [smem:[#allocation9_spill]] %s3884_s25  ;;  %p675_p3 = pnand %p2635_p1, %p674_p2 }
  0x13   : > { %p774_p4 = scmp.lt.s32.totalorder (!%p675_p3), %s3222_s23, 1  ;;  %s3861_s24 = sld [smem:[#allocation14_spill]] (!%p675_p3) }
  0x14   : > { %678 = sbr.rel (%p675_p3) target bundleno = 4221 (0x107d), region = 100  ;;  %s3862_s16 = sld [smem:[#allocation13_spill]] (!%p675_p3) }
  0x15   : > { %p2643_p5 = scmp.ne.s32.totalorder (!%p675_p3), %s3222_s23, 0 }
  0x1b   : > { %s3376_s3 = scalar_select %p774_p4, %s3222_s23, 1 }
  0x1c   : > { %818 = sbr.rel (%p2643_p5) target bundleno = 263 (0x107), region = 104  ;;  %v821_v1 = vld [vmem:[%s3831_s12] sm:$0xff] (!%p2643_p5)  ;;  %v822_v2 = vld [vmem:[%s3831_s12 + $0x8] sm:$0xff] (!%p2643_p5)  ;;  %vm825_vm0 = vcmask (!%p2643_p5), 130048   ;;  %v823_v3 = vld [vmem:[%s3831_s12 + $0x10] sm:$0xff] (!%p2643_p5)  ;;  %s3863_s28 = sld [smem:[#allocation10_spill]] (!%p2643_p5) }
  0x1d   : > { %s3092_s1 = smul.u32 96, %s3376_s3  ;;  %s2732_s22 = sshll.u32 %s3376_s3, 5  ;;  %v2964_v4 = vpack.c.bf16 (!%p2643_p5), %v822_v2, %v821_v1  ;;  %vm2965_vm1 = vmpackc.low (!%p2643_p5), %vm825_vm0, %vm825_vm0  ;;  %v824_v5 = vld [vmem:[%s3831_s12 + $0x18] sm:$0xff] (!%p2643_p5)  ;;  %v919_v9 = vld [vmem:[%s3832_s13] sm:$0xff] (!%p2643_p5)  ;;  %vm922_vm2 = vcmask (!%p2643_p5), 261120  }
  0x1e   : > { %s3391_s26 = scalar_lea.vmem %s3861_s24, %s2732_s22  ;;  %s792_s2 = scalar_lea.vmem %s3824_s5, %s3376_s3  ;;  %v2970_v7 = vpack.c.bf16 (!%p2643_p5), %v824_v5, %v823_v3 }
  0x1f   : > { %s3400_s15 = scalar_lea.vmem %s3862_s16, %s3092_s1  ;;  %s795_s29 = scalar_lea.vmem %s3825_s6, %s3376_s3  ;;  %2966 = vmatprep.subr.msk.bf16.mxu0 (!%p2643_p5), %vm2965_vm1, %v2964_v4 }
  0x20   : > { %s798_s21 = scalar_lea.vmem %s3826_s7, %s3376_s3  ;;  %s2733_s17 = sshll.u32 %s3376_s3, 6  ;;  %2969 = vmatpush3.bf16.xpose.msk.msra.mxu0 (!%p2643_p5), %vm2965_vm1, %v2964_v4 }
  0x21   : > { %s3414_s14 = scalar_lea.vmem %s3827_s8, %s2733_s17  ;;  %s806_s18 = scalar_lea.vmem %s3828_s9, %s3376_s3  ;;  %2972 = vmatprep.subr.msk.bf16.mxu0 (!%p2643_p5), %vm2965_vm1, %v2970_v7 }
  0x22   : > { %s3423_s1 = scalar_lea.vmem %s3829_s10, %s2732_s22  ;;  %s814_s30 = scalar_lea.vmem %s3830_s11, %s3376_s3  ;;  %v819_v6 = vld [vmem:[%s3863_s28] sm:$0xff] (!%p2643_p5)  ;;  %v820_v8 = vld [vmem:[%s3863_s28 + $0x8] sm:$0xff] (!%p2643_p5) }
  0x23   : > { %2818 = vmatprep.mubr.msk.f32.mxu0 %vm825_vm0, %v819_v6 }
  0x28   : > { %2975 = vmatpush3.bf16.xpose.msk.msra.mxu0 %vm2965_vm1, %v2970_v7 }
  0x2f   : > { %2819 = vmatmul.mubr.msk.f32.vlgmr.msra.gmra.mrb[0].mxu0 %vm825_vm0, %v820_v8 }
 0x102   : > { %v2820_v10 = vpop.f32.mrb[0].mxu0 }
 0x103   : > { %v921_v11 = vadd.f32 %v2820_v10, %v919_v9  ;;  %v910_v12 = vpop.f32.mrb[1].mxu0 }
 0x104   : > { %v920_v13 = vadd.f32 %v919_v9, %v910_v12 }
 0x105   : > { %924 = vst.msk [vmem:[#allocation2 + $0x8] sm:$0xff] %vm922_vm2, %v921_v11 }
 0x106   : > { %923 = vst.msk [vmem:[#allocation2] sm:$0xff] %vm922_vm2, %v920_v13 }
 0x107 PF: > { %vm929_vm3 = vcmask 261120   ;;  %v973_v18 = vld [vmem:[%s3400_s15] sm:$0xff]  ;;  %v974_v19 = vld [vmem:[%s3400_s15 + $0x8] sm:$0xff]  ;;  %v975_v22 = vld [vmem:[%s3400_s15 + $0x10] sm:$0xff]  ;;  %s3866_s27 = sld [smem:[#allocation11_spill]]  ;;  %s3868_s4 = sld [smem:[#allocation12_spill]] }
 0x108   : > { %vm3463_vm4 = vmpackc.low %vm929_vm3, %vm929_vm3  ;;  %v2976_v21 = vpack.c.bf16 %v974_v19, %v973_v18  ;;  %v976_v23 = vld [vmem:[%s3400_s15 + $0x18] sm:$0xff]  ;;  %v977_v25 = vld [vmem:[%s3400_s15 + $0x20] sm:$0xff]  ;;  %v3232_v63 = vmov 0.0   ;;  %vm3233_vm5 = vmmov 0   ;;  %s3234_s24 = smov 96   ;;  %vm1105_vm6 = vcmask 130048  }
 0x109   : > { %v2982_v24 = vpack.c.bf16 %v976_v23, %v975_v22  ;;  %v978_v26 = vld [vmem:[%s3400_s15 + $0x28] sm:$0xff]  ;;  %v979_v38 = vld [vmem:[%s3400_s15 + $0x30] sm:$0xff]  ;;  %v980_v39 = vld [vmem:[%s3400_s15 + $0x38] sm:$0xff]  ;;  %2848 = vmatprep.subr.mxu1 %v3232_v63  ;;  %2850 = vmatprep.mubr.msk.f32.mxu1 %vm3233_vm5, %v3232_v63  ;;  %vm1259_vm7 = vcmask 64512   ;;  %s3235_s17 = smov 64   ;;  %s3236_s25 = smov 80  }
 0x10a   : > { %2978 = vmatprep.subr.msk.bf16.mxu0 %vm3463_vm4, %v2976_v21  ;;  %v2988_v27 = vpack.c.bf16 %v978_v26, %v977_v25  ;;  %v2994_v40 = vpack.c.bf16 %v980_v39, %v979_v38  ;;  %v981_v41 = vld [vmem:[%s3400_s15 + $0x40] sm:$0xff]  ;;  %v982_v42 = vld [vmem:[%s3400_s15 + $0x48] sm:$0xff]  ;;  %v983_v44 = vld [vmem:[%s3400_s15 + $0x50] sm:$0xff]  ;;  %s3238_s20 = smov 48   ;;  %vm2075_vm8 = vcmask 523264   ;;  %p2705_p6 = scmp.ne.s32.totalorder %s3222_s23, 1 }
 0x10b   : > { %2981 = vmatpush3.bf16.xpose.msk.msra.mxu0 %vm3463_vm4, %v2976_v21  ;;  %v3000_v43 = vpack.c.bf16 %v982_v42, %v981_v41  ;;  %v984_v45 = vld [vmem:[%s3400_s15 + $0x58] sm:$0xff]  ;;  %s3237_s15 = smov 112   ;;  %vm3049_vm9 = vmpackc.low %vm2075_vm8, %vm2075_vm8  ;;  %vm2245_vm10 = vcmask (!%p2705_p6), 7168   ;;  %vm3242_vm11 = vmmov (!%p2705_p6), 0   ;;  %vm2335_vm12 = vcmask (!%p2705_p6), 1041409  }
 0x10c   : > { %v3453_v15 = vld [vmem:[#allocation2 + $0x8] sm:$0xff]  ;;  %2984 = vmatprep.subr.msk.bf16.mxu0 %vm3463_vm4, %v2982_v24  ;;  %v3006_v46 = vpack.c.bf16 %v984_v45, %v983_v44 }
 0x10d   : > { %v3451_v14 = vld [vmem:[#allocation2] sm:$0xff]  ;;  %v933_v17 = vsel %vm929_vm3, %v3453_v15, 0.0  ;;  %s3867_s22 = scalar_lea.vmem %s3866_s27, %s3376_s3  ;;  %s3869_s0 = scalar_lea.vmem %s3868_s4, %s3376_s3 }
 0x10e   : > { %v930_v16 = vsel %vm929_vm3, %v3451_v14, 0.0  ;;  %v2650_v54 = vld [vmem:[%s3867_s22] ss:$0 sm:$0xff]  ;;  %s3239_s27 = smov 16   ;;  %s3874_s4 = sld [smem:[#allocation19_spill]] (!%p2705_p6) }
 0x10f   : > { %931 = vadd.xlane.f32.xlu0 %v930_v16  ;;  %v2651_v56 = vld [vmem:[%s3869_s0] ss:$0 sm:$0xff] }
 0x113   : > { %934 = vadd.xlane.f32.xlu0 %v933_v17  ;;  %2987 = vmatpush3.bf16.xpose.msk.msra.mxu0 %vm3463_vm4, %v2982_v24 }
 0x114   : > { %2990 = vmatprep.subr.msk.bf16.mxu0 %vm3463_vm4, %v2988_v27 }
 0x11b   : > { %2993 = vmatpush3.bf16.xpose.msk.msra.mxu0 %vm3463_vm4, %v2988_v27 }
 0x11c   : > { %2996 = vmatprep.subr.msk.bf16.mxu0 %vm3463_vm4, %v2994_v40 }
 0x123   : > { %2999 = vmatpush3.bf16.xpose.msk.msra.mxu0 %vm3463_vm4, %v2994_v40 }
 0x124   : > { %3002 = vmatprep.subr.msk.bf16.mxu0 %vm3463_vm4, %v3000_v43 }
 0x12b   : > { %3005 = vmatpush3.bf16.xpose.msk.msra.mxu0 %vm3463_vm4, %v3000_v43 }
 0x12c   : > { %3008 = vmatprep.subr.msk.bf16.mxu0 %vm3463_vm4, %v3006_v46 }
 0x133   : > { %3011 = vmatpush3.bf16.xpose.msk.msra.mxu0 %vm3463_vm4, %v3006_v46 }
 0x19c   : > { %v932_v28 = vpop.xlane.xlu0 %931 }
 0x19d   : > { %v937_v29 = vmul.f32 0.03125, %v932_v28 }
 0x19f   : > { %v939_v30 = vsub.f32 %v3451_v14, %v937_v29 }
 0x1a0   : > { %v935_v31 = vpop.xlane.xlu0 %934 }
 0x1a1   : > { %v938_v32 = vmul.f32 0.03125, %v935_v31  ;;  %v941_v33 = vmul.f32 %v939_v30, %v939_v30 }
 0x1a3   : > { %v940_v34 = vsub.f32 %v3453_v15, %v938_v32  ;;  %v943_v35 = vsel %vm929_vm3, %v941_v33, 0.0 }
 0x1a4   : > { %944 = vadd.xlane.f32.xlu1 %v943_v35 }
 0x1a5   : > { %v942_v36 = vmul.f32 %v940_v34, %v940_v34 }
 0x1a7   : > { %v946_v37 = vsel %vm929_vm3, %v942_v36, 0.0 }
 0x1a8   : > { %947 = vadd.xlane.f32.xlu1 %v946_v37 }
 0x231   : > { %v945_v47 = vpop.xlane.xlu1 %944 }
 0x232   : > { %v949_v48 = vmul.f32 0.03125, %v945_v47 }
 0x234   : > { %v951_v49 = vadd.f32 1e-05, %v949_v48 }
 0x235   : > { %v948_v50 = vpop.xlane.xlu1 %947 }
 0x236   : > { %3136 = vrsqrt.f32 %v951_v49  ;;  %v950_v51 = vmul.f32 0.03125, %v948_v50 }
 0x238   : > { %v952_v52 = vadd.f32 1e-05, %v950_v51 }
 0x23a   : > { %3138 = vrsqrt.f32 %v952_v52 }
 0x240   : > { %v3137_v53 = vpop.eup %3136 }
 0x241   : > { %v955_v55 = vmul.f32 %v3137_v53, %v939_v30 }
 0x243   : > { %v963_v57 = vmul.f32 %v2650_v54, %v955_v55 }
 0x244   : > { %v3139_v58 = vpop.eup %3138 }
 0x245   : > { %v956_v59 = vmul.f32 %v3139_v58, %v940_v34  ;;  %v971_v60 = vadd.f32 %v2651_v56, %v963_v57 }
 0x247   : > { %v964_v61 = vmul.f32 %v2650_v54, %v956_v59  ;;  %2845 = vmatprep.mubr.msk.f32.mxu0 %vm929_vm3, %v971_v60 }
 0x249   : > { %v972_v62 = vadd.f32 %v2651_v56, %v964_v61 }
 0x24b   : > { %2846 = vmatmul.mubr.msk.f32.vlgmr.msra.gmra.mrb[0].mxu0 %vm929_vm3, %v972_v62 }
 0x31e   : > { %v3520_v0 = vpop.f32.mrb[0].mxu0 }
 0x31f   : > { %1181 = vrot.lane.b32.xlu1 %v3520_v0, %s3234_s24  ;;  %v3523_v1 = vpop.f32.mrb[1].mxu0 }
 0x320   : > { %1103 = vrot.lane.b32.xlu0 %v3523_v1, %s3234_s24  ;;  %s3871_s24 = sld [smem:[#allocation16_spill]] (!%p2705_p6) }
 0x391   : > { %v1182_v3 = vpop.permute.xlu1 %1181 }
 0x392   : > { %v1104_v2 = vpop.permute.xlu0 %1103 }
 0x393   : > { %2849 = vmatpush3.xpose.msk.msra.mxu1 %vm1105_vm6, %v1104_v2 }
 0x394   : > { %2853 = vmatprep.subr.mxu1 %v3232_v63 }
 0x396   : > { %2851 = vmatmul.mubr.msk.f32.vlgmr.msra.gmra.mrb[0].mxu1 %vm1105_vm6, %v3523_v1 }
 0x397   : > { %2854 = vmatpush3.xpose.msk.msra.mxu1 %vm1105_vm6, %v1182_v3  ;;  %2855 = vmatprep.mubr.msk.f32.mxu1 %vm3233_vm5, %v3232_v63 }
 0x398   : > { %2858 = vmatprep.subr.mxu1 %v3232_v63 }
 0x39a   : > { %2856 = vmatmul.mubr.msk.f32.vlgmr.msra.gmra.mrb[2].mxu1 %vm1105_vm6, %v3520_v0 }
 0x39b   : > { %2860 = vmatprep.mubr.msk.f32.mxu1 %vm3233_vm5, %v3232_v63 }
 0x469   : > { %v1176_v4 = vpop.f32.mrb[0].mxu1 }
 0x46a   : > { %v1257_v5 = vmul.f32 0.17677669, %v1176_v4  ;;  %v2852_v6 = vpop.f32.mrb[1].mxu1  ;;  %v1776_v4 = vld [vmem:[%s3391_s26] sm:$0xff] }
 0x46b   : > { %v1778_v6 = vld [vmem:[%s3391_s26 + $0x10] sm:$0xff] }
 0x46c   : > { %v1260_v7 = vsel %vm1259_vm7, %v1257_v5, -inf }
 0x46d   : > { %1261 = vmax.xlane.f32.xlu1 %v1260_v7  ;;  %v1253_v8 = vpop.f32.mrb[2].mxu1 }
 0x46e   : > { %v1258_v9 = vmul.f32 0.17677669, %v1253_v8  ;;  %v2857_v10 = vpop.f32.mrb[3].mxu1  ;;  %v1779_v8 = vld [vmem:[%s3391_s26 + $0x18] sm:$0xff] }
 0x470   : > { %v1263_v11 = vsel %vm1259_vm7, %v1258_v9, -inf }
 0x471   : > { %1264 = vmax.xlane.f32.xlu0 %v1263_v11 }
 0x47e   : > { %1358 = vrot.lane.b32.xlu1 %v3520_v0, %s3235_s17 }
 0x482   : > { %1436 = vrot.lane.b32.xlu1 %v3523_v1, %s3236_s25 }
 0x486   : > { %1434 = vrot.lane.b32.xlu1 %v3523_v1, %s3237_s15 }
 0x4fa   : > { %v1262_v12 = vpop.xlane.xlu1 %1261 }
 0x4fb   : > { %v1266_v13 = vsub.f32 %v1257_v5, %v1262_v12  ;;  %v1777_v5 = vld [vmem:[%s3391_s26 + $0x8] sm:$0xff]  ;;  %s3873_s26 = sld [smem:[#allocation18_spill]] (!%p2705_p6) }
 0x4fc   : > { %v3012_v7 = vpack.c.bf16 %v1777_v5, %v1776_v4  ;;  %v2066_v5 = vld [vmem:[%s3423_s1 + $0x10] sm:$0xff] }
 0x4fd   : > { %v1268_v16 = vmul.f32 1.442695, %v1266_v13 }
 0x4fe   : > { %v1265_v17 = vpop.xlane.xlu0 %1264  ;;  %v1359_v25 = vpop.permute.xlu1 %1358 }
 0x4ff   : > { %3140 = vpow2.f32 %v1268_v16  ;;  %v1267_v18 = vsub.f32 %v1258_v9, %v1265_v17  ;;  %v3018_v9 = vpack.c.bf16 %v1779_v8, %v1778_v6  ;;  %v2067_v6 = vld [vmem:[%s3423_s1 + $0x18] sm:$0xff]  ;;  %v2687_v8 = vld [vmem:[%s806_s18] ss:$0 sm:$0xff] }
 0x501   : > { %v1270_v19 = vmul.f32 1.442695, %v1267_v18 }
 0x502   : > { %v1437_v26 = vpop.permute.xlu1 %1436 }
 0x503   : > { %3142 = vpow2.f32 %v1270_v19  ;;  %v2678_v19 = vld [vmem:[%s792_s2] ss:$0 sm:$0xff] }
 0x506   : > { %v1435_v27 = vpop.permute.xlu1 %1434 }
 0x509   : > { %v3141_v21 = vpop.eup %3140 }
 0x50a   : > { %v1272_v22 = vsel %vm1259_vm7, %v3141_v21, 0.0 }
 0x50b   : > { %1273 = vadd.xlane.f32.xlu0 %v1272_v22 }
 0x50d   : > { %v3143_v23 = vpop.eup %3142 }
 0x50e   : > { %v1275_v24 = vsel %vm1259_vm7, %v3143_v23, 0.0 }
 0x50f   : > { %1276 = vadd.xlane.f32.xlu1 %v1275_v24 }
 0x520   : > { %1512 = vrot.lane.b32.xlu1 %v3520_v0, %s3237_s15  ;;  %s3872_s15 = sld [smem:[#allocation17_spill]] (!%p2705_p6) }
 0x521   : > { %1282 = vrot.lane.b32.xlu0 %v3523_v1, %s3235_s17 }
 0x525   : > { %1514 = vrot.lane.b32.xlu0 %v3520_v0, %s3236_s25 }
 0x598   : > { %v1274_v28 = vpop.xlane.xlu0 %1273 }
 0x599   : > { %3144 = vrcp.f32 %v1274_v28 }
 0x59c   : > { %v1277_v29 = vpop.xlane.xlu1 %1276  ;;  %v1283_v30 = vpop.permute.xlu0 %1282 }
 0x59d   : > { %3146 = vrcp.f32 %v1277_v29  ;;  %2859 = vmatpush3.msra.mxu1 %v1283_v30  ;;  %v1926_v29 = vld [vmem:[%s3414_s14] sm:$0xff]  ;;  %v1927_v30 = vld [vmem:[%s3414_s14 + $0x8] sm:$0xff] }
 0x59e   : > { %2863 = vmatprep.subr.mxu1 %v3232_v63 }
 0x5a0   : > { %v1515_v35 = vpop.permute.xlu0 %1514  ;;  %v1513_v36 = vpop.permute.xlu1 %1512 }
 0x5a3   : > { %v3145_v31 = vpop.eup %3144 }
 0x5a4   : > { %v1280_v32 = vmul.f32 %v3145_v31, %v3141_v21  ;;  %v3024_v31 = vpack.c.bf16 %v1927_v30, %v1926_v29 }
 0x5a6   : > { %2861 = vmatmul.mubr.msk.f32.vlgmr.msra.gmra.mrb[4].mxu1 %vm1259_vm7, %v1280_v32  ;;  %3026 = vmatprep.subr.msk.bf16.mxu0 %vm3463_vm4, %v3024_v31 }
 0x5a7   : > { %v3147_v33 = vpop.eup %3146  ;;  %2864 = vmatpush3.msra.mxu1 %v1359_v25  ;;  %2865 = vmatprep.mubr.msk.f32.mxu1 %vm3233_vm5, %v3232_v63 }
 0x5a8   : > { %v1281_v34 = vmul.f32 %v3147_v33, %v3143_v23  ;;  %2868 = vmatprep.subr.mxu1 %v3232_v63  ;;  %3029 = vmatpush3.bf16.xpose.msk.msra.mxu0 %vm3463_vm4, %v3024_v31 }
 0x5aa   : > { %2866 = vmatmul.mubr.msk.f32.vlgmr.msra.gmra.mrb[6].mxu1 %vm1259_vm7, %v1281_v34 }
 0x5ab   : > { %2870 = vmatprep.mubr.msk.f32.mxu1 %vm3233_vm5, %v3232_v63 }
 0x5ae   : > { %2869 = vmatpush3.xpose.msk.msra.mxu1 %vm1105_vm6, %v1437_v26 }
 0x5af   : > { %2873 = vmatprep.subr.mxu1 %v3232_v63 }
 0x5b1   : > { %2871 = vmatmul.mubr.msk.f32.vlgmr.msra.gmra.mrb[8].mxu1 %vm1105_vm6, %v1435_v27 }
 0x5b2   : > { %2874 = vmatpush3.xpose.msk.msra.mxu1 %vm1105_vm6, %v1515_v35  ;;  %2875 = vmatprep.mubr.msk.f32.mxu1 %vm3233_vm5, %v3232_v63 }
 0x5b3   : > { %2878 = vmatprep.subr.mxu1 %v3232_v63 }
 0x5b5   : > { %2876 = vmatmul.mubr.msk.f32.vlgmr.msra.gmra.mrb[10].mxu1 %vm1105_vm6, %v1513_v36 }
 0x5b6   : > { %2880 = vmatprep.mubr.msk.f32.mxu1 %vm3233_vm5, %v3232_v63 }
 0x679   : > { %v3566_v37 = vpop.f32.mrb[4].mxu1 }
 0x67a   : > { %v2862_v38 = vpop.f32.mrb[5].mxu1 }
 0x67d   : > { %v3568_v39 = vpop.f32.mrb[6].mxu1 }
 0x67e   : > { %v2867_v40 = vpop.f32.mrb[7].mxu1 }
 0x67f   : > { %v1928_v40 = vld [vmem:[%s3414_s14 + $0x10] sm:$0xff] }
 0x684   : > { %v1508_v41 = vpop.f32.mrb[8].mxu1 }
 0x685   : > { %v1590_v42 = vmul.f32 0.17677669, %v1508_v41  ;;  %v2872_v43 = vpop.f32.mrb[9].mxu1  ;;  %v1929_v41 = vld [vmem:[%s3414_s14 + $0x18] sm:$0xff] }
 0x686   : > { %v1930_v43 = vld [vmem:[%s3414_s14 + $0x20] sm:$0xff] }
 0x687   : > { %v1592_v44 = vsel %vm1259_vm7, %v1590_v42, -inf }
 0x688   : > { %1593 = vmax.xlane.f32.xlu0 %v1592_v44  ;;  %v1586_v45 = vpop.f32.mrb[10].mxu1  ;;  %v1931_v44 = vld [vmem:[%s3414_s14 + $0x28] sm:$0xff] }
 0x689   : > { %v1591_v46 = vmul.f32 0.17677669, %v1586_v45  ;;  %v2877_v47 = vpop.f32.mrb[11].mxu1  ;;  %v3036_v45 = vpack.c.bf16 %v1931_v44, %v1930_v43 }
 0x68a   : > { %v1933_v47 = vld [vmem:[%s3414_s14 + $0x38] sm:$0xff] }
 0x68b   : > { %v1595_v48 = vsel %vm1259_vm7, %v1591_v46, -inf }
 0x68c   : > { %1596 = vmax.xlane.f32.xlu1 %v1595_v48 }
 0x69d   : > { %1690 = vrot.lane.b32.xlu1 %v3520_v0, %s3238_s20 }
 0x715   : > { %v1594_v49 = vpop.xlane.xlu0 %1593 }
 0x716   : > { %v1598_v50 = vsub.f32 %v1590_v42, %v1594_v49  ;;  %v3030_v42 = vpack.c.bf16 %v1929_v41, %v1928_v40 }
 0x718   : > { %v1600_v51 = vmul.f32 1.442695, %v1598_v50  ;;  %3032 = vmatprep.subr.msk.bf16.mxu0 %vm3463_vm4, %v3030_v42 }
 0x719   : > { %v1597_v52 = vpop.xlane.xlu1 %1596  ;;  %3035 = vmatpush3.bf16.xpose.msk.msra.mxu0 %vm3463_vm4, %v3030_v42 }
 0x71a   : > { %3148 = vpow2.f32 %v1600_v51  ;;  %v1599_v53 = vsub.f32 %v1591_v46, %v1597_v52  ;;  %3038 = vmatprep.subr.msk.bf16.mxu0 %vm3463_vm4, %v3036_v45  ;;  %v1932_v46 = vld [vmem:[%s3414_s14 + $0x30] sm:$0xff] }
 0x71b   : > { %v3042_v48 = vpack.c.bf16 %v1933_v47, %v1932_v46 }
 0x71c   : > { %v1602_v54 = vmul.f32 1.442695, %v1599_v53 }
 0x71d   : > { %v1691_v2 = vpop.permute.xlu1 %1690 }
 0x71e   : > { %3150 = vpow2.f32 %v1602_v54 }
 0x721   : > { %3041 = vmatpush3.bf16.xpose.msk.msra.mxu0 %vm3463_vm4, %v3036_v45 }
 0x722   : > { %3044 = vmatprep.subr.msk.bf16.mxu0 %vm3463_vm4, %v3042_v48 }
 0x724   : > { %v3149_v55 = vpop.eup %3148 }
 0x725   : > { %v1604_v56 = vsel %vm1259_vm7, %v3149_v55, 0.0 }
 0x726   : > { %1605 = vadd.xlane.f32.xlu0 %v1604_v56  ;;  %v2685_v56 = vld [vmem:[%s795_s29] ss:$0 sm:$0xff] }
 0x728   : > { %v3151_v57 = vpop.eup %3150 }
 0x729   : > { %v1607_v58 = vsel %vm1259_vm7, %v3151_v57, 0.0  ;;  %3047 = vmatpush3.bf16.xpose.msk.msra.mxu0 %vm3463_vm4, %v3042_v48 }
 0x72a   : > { %1608 = vadd.xlane.f32.xlu0 %v1607_v58  ;;  %v2686_v58 = vld [vmem:[%s798_s21] ss:$0 sm:$0xff] }
 0x740   : > { %1614 = vrot.lane.b32.xlu0 %v3523_v1, %s3238_s20 }
 0x7b3   : > { %v1606_v59 = vpop.xlane.xlu0 %1605 }
 0x7b4   : > { %3152 = vrcp.f32 %v1606_v59 }
 0x7b7   : > { %v1609_v60 = vpop.xlane.xlu0 %1608 }
 0x7b8   : > { %3154 = vrcp.f32 %v1609_v60 }
 0x7bb   : > { %v1615_v61 = vpop.permute.xlu0 %1614 }
 0x7bc   : > { %2879 = vmatpush3.msra.mxu1 %v1615_v61 }
 0x7bd   : > { %2883 = vmatprep.subr.mxu1 %v3232_v63 }
 0x7be   : > { %v3153_v62 = vpop.eup %3152 }
 0x7bf   : > { %v1612_v0 = vmul.f32 %v3153_v62, %v3149_v55 }
 0x7c1   : > { %2881 = vmatmul.mubr.msk.f32.vlgmr.msra.gmra.mrb[12].mxu1 %vm1259_vm7, %v1612_v0 }
 0x7c2   : > { %v3155_v3 = vpop.eup %3154  ;;  %2884 = vmatpush3.msra.mxu1 %v1691_v2  ;;  %2885 = vmatprep.mubr.msk.f32.mxu1 %vm3233_vm5, %v3232_v63 }
 0x7c3   : > { %v1613_v1 = vmul.f32 %v3155_v3, %v3151_v57  ;;  %3014 = vmatprep.subr.msk.bf16.mxu1 %vm3463_vm4, %v3012_v7  ;;  %v2064_v3 = vld [vmem:[%s3423_s1] sm:$0xff] }
 0x7c5   : > { %2886 = vmatmul.mubr.msk.f32.vlgmr.msra.gmra.mrb[14].mxu1 %vm1259_vm7, %v1613_v1  ;;  %v2065_v1 = vld [vmem:[%s3423_s1 + $0x8] sm:$0xff] }
 0x7c6   : > { %v3048_v4 = vpack.c.bf16 %v2065_v1, %v2064_v3 }
 0x7c9   : > { %3017 = vmatpush3.bf16.xpose.msk.msra.mxu1 %vm3463_vm4, %v3012_v7  ;;  %v3054_v7 = vpack.c.bf16 %v2067_v6, %v2066_v5 }
 0x7ca   : > { %3020 = vmatprep.subr.msk.bf16.mxu1 %vm3463_vm4, %v3018_v9 }
 0x7d1   : > { %3023 = vmatpush3.bf16.xpose.msk.msra.mxu1 %vm3463_vm4, %v3018_v9 }
 0x7d2   : > { %3050 = vmatprep.subr.msk.bf16.mxu1 %vm3049_vm9, %v3048_v4 }
 0x894   : > { %v1686_v63 = vpop.f32.mrb[12].mxu1 }
 0x895   : > { %1768 = vrot.lane.b32.xlu1 %v1686_v63, %s3239_s27  ;;  %v2882_v10 = vpop.f32.mrb[13].mxu1 }
 0x898   : > { %v1762_v11 = vpop.f32.mrb[14].mxu1 }
 0x899   : > { %1770 = vrot.lane.b32.xlu1 %v1762_v11, %s3239_s27  ;;  %v2887_v12 = vpop.f32.mrb[15].mxu1 }
 0x907   : > { %v1769_v13 = vpop.permute.xlu1 %1768 }
 0x908   : > { %v1774_v16 = vsel %vm1105_vm6, %v3566_v37, %v1769_v13 }
 0x909   : > { %2896 = vmatprep.mubr.msk.f32.mxu1 %vm929_vm3, %v1774_v16 }
 0x90b   : > { %v1771_v17 = vpop.permute.xlu1 %1770 }
 0x90c   : > { %v1775_v18 = vsel %vm1105_vm6, %v3568_v39, %v1771_v17 }
 0x90d   : > { %2897 = vmatmul.mubr.msk.f32.vlgmr.msra.gmra.mrb[16].mxu1 %vm929_vm3, %v1775_v18 }
 0x90e   : > { %3053 = vmatpush3.bf16.xpose.msk.msra.mxu1 %vm3049_vm9, %v3048_v4 }
 0x90f   : > { %3056 = vmatprep.subr.msk.bf16.mxu1 %vm3049_vm9, %v3054_v7 }
 0x916   : > { %3059 = vmatpush3.bf16.xpose.msk.msra.mxu1 %vm3049_vm9, %v3054_v7 }
 0x9e0   : > { %v2898_v21 = vpop.f32.mrb[16].mxu1 }
 0x9e1   : > { %v1877_v22 = vadd.f32 %v2898_v21, %v2678_v19  ;;  %v1871_v23 = vpop.f32.mrb[17].mxu1 }
 0x9e2   : > { %v1872_v24 = vadd.f32 %v2678_v19, %v1871_v23 }
 0x9e3   : > { %v3605_v25 = vadd.f32 %v1877_v22, %v3453_v15 }
 0x9e4   : > { %v3608_v26 = vadd.f32 %v1872_v24, %v3451_v14 }
 0x9e5   : > { %v1887_v27 = vsel %vm929_vm3, %v3605_v25, 0.0 }
 0x9e6   : > { %1888 = vadd.xlane.f32.xlu1 %v1887_v27  ;;  %v1884_v28 = vsel %vm929_vm3, %v3608_v26, 0.0 }
 0x9e7   : > { %1885 = vadd.xlane.f32.xlu0 %v1884_v28 }
 0xa73   : > { %v1889_v14 = vpop.xlane.xlu1 %1888 }
 0xa74   : > { %v1891_v15 = vmul.f32 0.03125, %v1889_v14  ;;  %v1886_v32 = vpop.xlane.xlu0 %1885 }
 0xa75   : > { %v1890_v33 = vmul.f32 0.03125, %v1886_v32 }
 0xa76   : > { %v1893_v34 = vsub.f32 %v3605_v25, %v1891_v15 }
 0xa77   : > { %v1892_v35 = vsub.f32 %v3608_v26, %v1890_v33  ;;  %v2698_v33 = vld [vmem:[%s814_s30] ss:$0 sm:$0xff]  ;;  %s3870_s30 = sld [smem:[#allocation15_spill]] (!%p2705_p6) }
 0xa78   : > { %v1895_v38 = vmul.f32 %v1893_v34, %v1893_v34 }
 0xa79   : > { %v1894_v36 = vmul.f32 %v1892_v35, %v1892_v35 }
 0xa7a   : > { %v1899_v39 = vsel %vm929_vm3, %v1895_v38, 0.0 }
 0xa7b   : > { %v1896_v37 = vsel %vm929_vm3, %v1894_v36, 0.0 }
 0xa7c   : > { %1897 = vadd.xlane.f32.xlu0 %v1896_v37 }
 0xa80   : > { %1900 = vadd.xlane.f32.xlu0 %v1899_v39 }
 0xb09   : > { %v1898_v49 = vpop.xlane.xlu0 %1897 }
 0xb0a   : > { %v1902_v50 = vmul.f32 0.03125, %v1898_v49 }
 0xb0c   : > { %v1904_v51 = vadd.f32 1e-05, %v1902_v50 }
 0xb0d   : > { %v1901_v52 = vpop.xlane.xlu0 %1900 }
 0xb0e   : > { %3156 = vrsqrt.f32 %v1904_v51  ;;  %v1903_v53 = vmul.f32 0.03125, %v1901_v52 }
 0xb10   : > { %v1905_v54 = vadd.f32 1e-05, %v1903_v53 }
 0xb12   : > { %3158 = vrsqrt.f32 %v1905_v54 }
 0xb18   : > { %v3157_v55 = vpop.eup %3156 }
 0xb19   : > { %v1908_v57 = vmul.f32 %v3157_v55, %v1892_v35 }
 0xb1b   : > { %v1916_v59 = vmul.f32 %v2685_v56, %v1908_v57  ;;  %v2706_v57 = vld [vmem:[%s3870_s30] ss:$0 sm:$0xff] (!%p2705_p6) }
 0xb1c   : > { %v3159_v60 = vpop.eup %3158 }
 0xb1d   : > { %v1909_v61 = vmul.f32 %v3159_v60, %v1893_v34  ;;  %v1924_v62 = vadd.f32 %v2686_v58, %v1916_v59  ;;  %v2707_v59 = vld [vmem:[%s3871_s24] ss:$0 sm:$0xff] (!%p2705_p6) }
 0xb1f   : > { %v1917_v0 = vmul.f32 %v2685_v56, %v1909_v61  ;;  %2915 = vmatprep.mubr.msk.f32.mxu0 %vm929_vm3, %v1924_v62  ;;  %v2708_v62 = vld [vmem:[%s3872_s15] ss:$0 sm:$0xff] (!%p2705_p6) }
 0xb21   : > { %v1925_v2 = vadd.f32 %v2686_v58, %v1917_v0 }
 0xb23   : > { %2916 = vmatmul.mubr.msk.f32.vlgmr.msra.gmra.mrb[2].mxu0 %vm929_vm3, %v1925_v2 }
 0xbf6   : > { %v2917_v9 = vpop.f32.mrb[2].mxu0 }
 0xbf7   : > { %v2043_v63 = vadd.f32 %v2917_v9, %v2687_v8  ;;  %v2037_v10 = vpop.f32.mrb[3].mxu0  ;;  %v2310_v9 = vld [vmem:[%s3873_s26] sm:$0xff] (!%p2705_p6) }
 0xbf8   : > { %v2038_v11 = vadd.f32 %v2687_v8, %v2037_v10  ;;  %v3240_v8 = vmov (!%p2705_p6), 0   ;;  %v3241_v10 = vmov (!%p2705_p6), 0.0|0.0  }
 0xbf9   : > { %v2049_v12 = vmul.f32 0.044715, %v2043_v63  ;;  %v2047_v14 = vmul.f32 0.5, %v2043_v63  ;;  %3164 = vset.pattern.permute.xlu0 (!%p2705_p6), %v3240_v8  ;;  %3165 = vset.pattern.permute.xlu1 (!%p2705_p6), %v3240_v8 }
 0xbfa   : > { %v2048_v13 = vmul.f32 0.044715, %v2038_v11  ;;  %v2046_v30 = vmul.f32 0.5, %v2038_v11  ;;  %3060 = vmatprep.subr.bf16.mxu0 (!%p2705_p6), %v3241_v10 }
 0xbfb   : > { %v2051_v16 = vmul.f32 %v2049_v12, %v2043_v63  ;;  %v2312_v12 = vld [vmem:[%s3873_s26 + $0x10] sm:$0xff] (!%p2705_p6) }
 0xbfc   : > { %v2050_v17 = vmul.f32 %v2048_v13, %v2038_v11  ;;  %v2313_v13 = vld [vmem:[%s3873_s26 + $0x18] sm:$0xff] (!%p2705_p6) }
 0xbfd   : > { %v2053_v18 = vmul.f32 %v2051_v16, %v2043_v63  ;;  %v3065_v16 = vpack.c.bf16 (!%p2705_p6), %v2313_v13, %v2312_v12  ;;  %v2324_v13 = vld [vmem:[%s3873_s26 + $0x70] sm:$0xff] (!%p2705_p6) }
 0xbfe   : > { %v2052_v19 = vmul.f32 %v2050_v17, %v2038_v11  ;;  %v2314_v17 = vld [vmem:[%s3873_s26 + $0x20] sm:$0xff] (!%p2705_p6) }
 0xbff   : > { %v2055_v21 = vadd.f32 %v2053_v18, %v2043_v63  ;;  %v2311_v63 = vld [vmem:[%s3873_s26 + $0x8] sm:$0xff] (!%p2705_p6) }
 0xc00   : > { %v2054_v22 = vadd.f32 %v2052_v19, %v2038_v11  ;;  %v3061_v11 = vpack.c.bf16 (!%p2705_p6), %v2311_v63, %v2310_v9  ;;  %v2315_v18 = vld [vmem:[%s3873_s26 + $0x28] sm:$0xff] (!%p2705_p6)  ;;  %v2322_v63 = vld [vmem:[%s3873_s26 + $0x60] sm:$0xff] (!%p2705_p6) }
 0xc01   : > { %v2057_v23 = vmul.f32 0.7978846, %v2055_v21  ;;  %v3069_v19 = vpack.c.bf16 (!%p2705_p6), %v2315_v18, %v2314_v17  ;;  %v2316_v21 = vld [vmem:[%s3873_s26 + $0x30] sm:$0xff] (!%p2705_p6)  ;;  %v3243_v18 = vmov (!%p2705_p6), 0.0  }
 0xc02   : > { %v2056_v24 = vmul.f32 0.7978846, %v2054_v22  ;;  %3063 = vmatpush3.bf16.xpose.msk.msra.mxu0 (!%p2705_p6), %vm3463_vm4, %v3061_v11  ;;  %v2317_v22 = vld [vmem:[%s3873_s26 + $0x38] sm:$0xff] (!%p2705_p6)  ;;  %v2323_v11 = vld [vmem:[%s3873_s26 + $0x68] sm:$0xff] (!%p2705_p6)  ;;  %2961 = vmatprep.mubr.msk.f32.mxu0 (!%p2705_p6), %vm3242_vm11, %v3243_v18 }
 0xc03   : > { %3160 = vtanh.f32 %v2057_v23  ;;  %3064 = vmatprep.subr.bf16.mxu0 (!%p2705_p6), %v3241_v10  ;;  %v3073_v23 = vpack.c.bf16 (!%p2705_p6), %v2317_v22, %v2316_v21  ;;  %v3085_v12 = vpack.c.bf16 (!%p2705_p6), %v2323_v11, %v2322_v63 }
 0xc04   : > { %3162 = vtanh.f32 %v2056_v24  ;;  %v2318_v24 = vld [vmem:[%s3873_s26 + $0x40] sm:$0xff] (!%p2705_p6) }
 0xc0a   : > { %3067 = vmatpush3.bf16.xpose.msk.msra.mxu0 (!%p2705_p6), %vm3463_vm4, %v3065_v16  ;;  %v2325_v16 = vld [vmem:[%s3873_s26 + $0x78] sm:$0xff] (!%p2705_p6) }
 0xc0b   : > { %3068 = vmatprep.subr.bf16.mxu0 (!%p2705_p6), %v3241_v10  ;;  %v3089_v17 = vpack.c.bf16 (!%p2705_p6), %v2325_v16, %v2324_v13 }
 0xc0d   : > { %v3161_v27 = vpop.eup %3160 }
 0xc0e   : > { %v3163_v28 = vpop.eup %3162  ;;  %v2061_v29 = vadd.f32 1.0, %v3161_v27  ;;  %v2319_v27 = vld [vmem:[%s3873_s26 + $0x48] sm:$0xff] (!%p2705_p6) }
 0xc0f   : > { %v2060_v31 = vadd.f32 1.0, %v3163_v28  ;;  %v3077_v28 = vpack.c.bf16 (!%p2705_p6), %v2319_v27, %v2318_v24 }
 0xc10   : > { %v2063_v32 = vmul.f32 %v2061_v29, %v2047_v14  ;;  %v2320_v29 = vld [vmem:[%s3873_s26 + $0x50] sm:$0xff] (!%p2705_p6) }
 0xc11   : > { %v2062_v15 = vmul.f32 %v2060_v31, %v2046_v30  ;;  %v2321_v30 = vld [vmem:[%s3873_s26 + $0x58] sm:$0xff] (!%p2705_p6)  ;;  %v2709_v14 = vld [vmem:[#allocation3] ss:$0 sm:$0xff] (!%p2705_p6) }
 0xc12   : > { %3071 = vmatpush3.bf16.xpose.msk.msra.mxu0 (!%p2705_p6), %vm3463_vm4, %v3069_v19  ;;  %v3081_v31 = vpack.c.bf16 (!%p2705_p6), %v2321_v30, %v2320_v29 }
 0xc13   : > { %2926 = vmatprep.mubr.msk.f32.mxu1 %vm2075_vm8, %v2062_v15  ;;  %3072 = vmatprep.subr.bf16.mxu0 (!%p2705_p6), %v3241_v10 }
 0xc14   : > { %2927 = vmatmul.mubr.msk.f32.vlgmr.msra.gmra.mrb[18].mxu1 %vm2075_vm8, %v2063_v32 }
 0xc1a   : > { %3075 = vmatpush3.bf16.xpose.msk.msra.mxu0 (!%p2705_p6), %vm3463_vm4, %v3073_v23 }
 0xc1b   : > { %3076 = vmatprep.subr.bf16.mxu0 (!%p2705_p6), %v3241_v10 }
 0xc22   : > { %3079 = vmatpush3.bf16.xpose.msk.msra.mxu0 (!%p2705_p6), %vm3463_vm4, %v3077_v28 }
 0xc23   : > { %3080 = vmatprep.subr.bf16.mxu0 (!%p2705_p6), %v3241_v10 }
 0xc2a   : > { %3083 = vmatpush3.bf16.xpose.msk.msra.mxu0 (!%p2705_p6), %vm3463_vm4, %v3081_v31 }
 0xc2b   : > { %3084 = vmatprep.subr.bf16.mxu0 (!%p2705_p6), %v3241_v10 }
 0xc32   : > { %3087 = vmatpush3.bf16.xpose.msk.msra.mxu0 (!%p2705_p6), %vm3463_vm4, %v3085_v12 }
 0xc33   : > { %3088 = vmatprep.subr.bf16.mxu0 (!%p2705_p6), %v3241_v10 }
 0xc3a   : > { %3091 = vmatpush3.bf16.xpose.msk.msra.mxu0 (!%p2705_p6), %vm3463_vm4, %v3089_v17 }
 0xce7   : > { %v2928_v34 = vpop.f32.mrb[18].mxu1  ;;  %2176 = sbr.rel (%p2705_p6) target bundleno = 4186 (0x105a), region = 108 }
 0xce8   : > { %v2166_v35 = vadd.f32 %v2928_v34, %v2698_v33  ;;  %v2160_v36 = vpop.f32.mrb[19].mxu1 }
 0xce9   : > { %v2161_v37 = vadd.f32 %v2698_v33, %v2160_v36 }
 0xcea   : > { %v2170_v38 = vadd.f32 %v2166_v35, %v3605_v25 }
 0xceb   : > { %v2169_v39 = vadd.f32 %v2161_v37, %v3608_v26 }
 0xcec   : > { %2172 = vst.msk [vmem:[#allocation2 + $0x8] sm:$0xff] %vm929_vm3, %v2170_v38  ;;  %v2182_v41 = vsel (!%p2705_p6), %vm929_vm3, %v2170_v38, 0.0 }
 0xced   : > { %2171 = vst.msk [vmem:[#allocation2] sm:$0xff] %vm929_vm3, %v2169_v39  ;;  %v2179_v40 = vsel (!%p2705_p6), %vm929_vm3, %v2169_v39, 0.0 }
 0xcee   : > { %2180 = vadd.xlane.f32.xlu0 %v2179_v40 }
 0xcf2   : > { %2183 = vadd.xlane.f32.xlu0 %v2182_v41 }
 0xd7b   : > { %v2181_v42 = vpop.xlane.xlu0 %2180 }
 0xd7c   : > { %v2185_v43 = vmul.f32 0.03125, %v2181_v42 }
 0xd7e   : > { %v2187_v44 = vsub.f32 %v2169_v39, %v2185_v43 }
 0xd7f   : > { %v2184_v45 = vpop.xlane.xlu0 %2183 }
 0xd80   : > { %v2186_v25 = vmul.f32 0.03125, %v2184_v45  ;;  %v2189_v46 = vmul.f32 %v2187_v44, %v2187_v44 }
 0xd82   : > { %v2188_v26 = vsub.f32 %v2170_v38, %v2186_v25  ;;  %v2191_v47 = vsel %vm929_vm3, %v2189_v46, 0.0 }
 0xd83   : > { %2192 = vadd.xlane.f32.xlu1 %v2191_v47 }
 0xd84   : > { %v2190_v48 = vmul.f32 %v2188_v26, %v2188_v26 }
 0xd86   : > { %v2194_v49 = vsel %vm929_vm3, %v2190_v48, 0.0 }
 0xd87   : > { %2195 = vadd.xlane.f32.xlu1 %v2194_v49 }
 0xe10   : > { %v2193_v50 = vpop.xlane.xlu1 %2192 }
 0xe11   : > { %v2197_v51 = vmul.f32 0.03125, %v2193_v50 }
 0xe13   : > { %v2199_v52 = vadd.f32 1e-05, %v2197_v51 }
 0xe14   : > { %v2196_v53 = vpop.xlane.xlu1 %2195 }
 0xe15   : > { %3166 = vrsqrt.f32 %v2199_v52  ;;  %v2198_v54 = vmul.f32 0.03125, %v2196_v53 }
 0xe17   : > { %v2200_v55 = vadd.f32 1e-05, %v2198_v54 }
 0xe19   : > { %3168 = vrsqrt.f32 %v2200_v55 }
 0xe1f   : > { %v3167_v56 = vpop.eup %3166 }
 0xe20   : > { %v2203_v58 = vmul.f32 %v3167_v56, %v2187_v44 }
 0xe22   : > { %v2211_v60 = vmul.f32 %v2706_v57, %v2203_v58 }
 0xe23   : > { %v3169_v61 = vpop.eup %3168 }
 0xe24   : > { %v3690_v0 = vadd.f32 %v2707_v59, %v2211_v60  ;;  %v2204_v2 = vmul.f32 %v3169_v61, %v2188_v26 }
 0xe26   : > { %v2228_v3 = vmul.f32 %v2708_v62, %v3690_v0  ;;  %v2212_v1 = vmul.f32 %v2706_v57, %v2204_v2 }
 0xe28   : > { %v2230_v4 = vsel %vm929_vm3, %v2228_v3, 0.0  ;;  %v3694_v5 = vadd.f32 %v2707_v59, %v2212_v1 }
 0xe29   : > { %2231 = vadd.xlane.f32.xlu0 %v2230_v4 }
 0xe2a   : > { %v2229_v6 = vmul.f32 %v2708_v62, %v3694_v5 }
 0xe2c   : > { %v2233_v7 = vsel %vm929_vm3, %v2229_v6, 0.0 }
 0xe2d   : > { %2234 = vadd.xlane.f32.xlu1 %v2233_v7 }
 0xeb6   : > { %v2232_v15 = vpop.xlane.xlu0 %2231 }
 0xeb7   : > { %v2243_v32 = vadd.f32 %v2709_v14, %v2232_v15 }
 0xeb9   : > { %v2246_v33 = vsel %vm2245_vm10, %v2243_v32, -inf }
 0xeba   : > { %v2247_v34 = vrot.slane %v2246_v33, 4  ;;  %v2235_v35 = vpop.xlane.xlu1 %2234 }
 0xebb   : > { %v2244_v36 = vadd.f32 %v2709_v14, %v2235_v35 }
 0xebc   : > { %v2248_v37 = vmax.f32 %v2246_v33, %v2247_v34 }
 0xebd   : > { %v2253_v38 = vsel %vm2245_vm10, %v2244_v36, -inf }
 0xebe   : > { %v2249_v39 = vrot.slane %v2248_v37, 2  ;;  %v2254_v40 = vrot.slane %v2253_v38, 4 }
 0xec0   : > { %v2250_v41 = vmax.f32 %v2248_v37, %v2249_v39  ;;  %v2255_v42 = vmax.f32 %v2253_v38, %v2254_v40 }
 0xec2   : > { %v2251_v43 = vrot.slane %v2250_v41, 1  ;;  %v2256_v44 = vrot.slane %v2255_v42, 2 }
 0xec4   : > { %v2252_v45 = vmax.f32 %v2250_v41, %v2251_v43  ;;  %v2257_v25 = vmax.f32 %v2255_v42, %v2256_v44 }
 0xec6   : > { %v2260_v46 = vsub.f32 %v2243_v32, %v2252_v45  ;;  %v2258_v26 = vrot.slane %v2257_v25, 1 }
 0xec8   : > { %v2262_v47 = vmul.f32 1.442695, %v2260_v46  ;;  %v2259_v48 = vmax.f32 %v2257_v25, %v2258_v26 }
 0xeca   : > { %3170 = vpow2.f32 %v2262_v47  ;;  %v2261_v49 = vsub.f32 %v2244_v36, %v2259_v48 }
 0xecc   : > { %v2264_v50 = vmul.f32 1.442695, %v2261_v49 }
 0xece   : > { %3172 = vpow2.f32 %v2264_v50 }
 0xed4   : > { %v3171_v51 = vpop.eup %3170 }
 0xed5   : > { %v2266_v52 = vsel %vm2245_vm10, %v3171_v51, 0.0 }
 0xed6   : > { %v2267_v53 = vrot.slane %v2266_v52, 4 }
 0xed8   : > { %v3173_v54 = vpop.eup %3172  ;;  %v2268_v55 = vadd.f32 %v2267_v53, %v2266_v52 }
 0xed9   : > { %v2273_v56 = vsel %vm2245_vm10, %v3173_v54, 0.0 }
 0xeda   : > { %v2269_v57 = vrot.slane %v2268_v55, 2  ;;  %v2274_v58 = vrot.slane %v2273_v56, 4 }
 0xedc   : > { %v2270_v59 = vadd.f32 %v2269_v57, %v2268_v55  ;;  %v2275_v60 = vadd.f32 %v2274_v58, %v2273_v56 }
 0xede   : > { %v2271_v61 = vrot.slane %v2270_v59, 1  ;;  %v2276_v62 = vrot.slane %v2275_v60, 2 }
 0xee0   : > { %v2272_v2 = vadd.f32 %v2271_v61, %v2270_v59  ;;  %v2277_v3 = vadd.f32 %v2276_v62, %v2275_v60 }
 0xee2   : > { %3174 = vrcp.f32 %v2272_v2  ;;  %v2278_v1 = vrot.slane %v2277_v3, 1 }
 0xee4   : > { %v2279_v4 = vadd.f32 %v2278_v1, %v2277_v3 }
 0xee6   : > { %3176 = vrcp.f32 %v2279_v4 }
 0xeec   : > { %v3175_v6 = vpop.eup %3174 }
 0xeed   : > { %v2282_v7 = vmul.f32 %v3175_v6, %v3171_v51 }
 0xeef   : > { %2286 = vperm.xlu0 %3164, %v2282_v7  }
 0xef0   : > { %v3177_v8 = vpop.eup %3176 }
 0xef1   : > { %v2283_v9 = vmul.f32 %v3177_v8, %v3173_v54 }
 0xef3   : > { %2291 = vperm.xlu1 %3165, %v2283_v9  }
 0xf6e   : > { %v2287_v19 = vpop.permute.xlu0 %2286 }
 0xf6f   : > { %v2294_v21 = vmul.f32 %v2287_v19, %v3690_v0 }
 0xf71   : > { %v2296_v10 = vsel %vm929_vm3, %v2294_v21, 0.0 }
 0xf72   : > { %v2297_v22 = vrot.slane %v2296_v10, 4  ;;  %v2292_v23 = vpop.permute.xlu1 %2291 }
 0xf73   : > { %v2295_v24 = vmul.f32 %v2292_v23, %v3694_v5  ;;  %v2710_v5 = vld [vmem:[%s3874_s4] ss:$0 sm:$0xff] }
 0xf74   : > { %v2298_v27 = vadd.f32 %v2297_v22, %v2296_v10 }
 0xf75   : > { %v2303_v28 = vsel %vm929_vm3, %v2295_v24, 0.0 }
 0xf76   : > { %v2299_v29 = vrot.slane %v2298_v27, 2  ;;  %v2304_v30 = vrot.slane %v2303_v28, 4 }
 0xf78   : > { %v2300_v31 = vadd.f32 %v2299_v29, %v2298_v27  ;;  %v2305_v20 = vadd.f32 %v2304_v30, %v2303_v28 }
 0xf7a   : > { %v2306_v14 = vrot.slane %v2305_v20, 2  ;;  %v2301_v15 = vrot.slane %v2300_v31, 1 }
 0xf7c   : > { %v2307_v32 = vadd.f32 %v2306_v14, %v2305_v20  ;;  %v2302_v34 = vadd.f32 %v2301_v15, %v2300_v31 }
 0xf7e   : > { %v2308_v33 = vrot.slane %v2307_v32, 1 }
 0xf80   : > { %v2309_v0 = vadd.f32 %v2308_v33, %v2307_v32 }
 0xf82   : > { %v2336_v35 = vsel %vm2335_vm12, %v2309_v0, %v2302_v34 }
 0xf83   : > { %2962 = vmatmul.mubr.msk.f32.vlgmr.msra.gmra.mrb[0].mxu0 %vm929_vm3, %v2336_v35 }
0x1056   : > { %v2453_v36 = vpop.f32.mrb[0].mxu0 }
0x1057   : > { %v2454_v37 = vadd.f32 %v2710_v5, %v2453_v36  ;;  %v2963_v38 = vpop.f32.mrb[1].mxu0 }
0x1059   : > { %2457 = vst [vmem:[#allocation4] sm:$0x3] %v2454_v37 }
0x105a PF: > { %s3875_s0 = sld [smem:[#allocation8_spill]]  ;;  %s3244_s25 = smov [#allocation4]  }
0x105b   : > { %s2467_s15 = sshll.u32 %s3244_s25, 4  ;;  %s2468_s15 = int_to_ptr.vmem [resolvable:$true] %s2467_s15 }
0x105c   : > { %s3178_s20 = scalar_lea.vmem %s2468_s15, 32  ;;  %p3185_p11 = scmp.lt.s32.totalorder %s2468_s15, %s2468_s15 }
0x105d   : > { %p3179_p8 = scmp.ne.s32.totalorder %s2468_s15, %s3178_s20  ;;  %p3186_p12 = scmp.lt.s32.totalorder %s3178_s20, %s3178_s20 }
0x105f   : > { %p3187_p13 = por %p3186_p12, %p3185_p11 }
0x1060   : > { %s3876_s24 = sadd.s32 4294967295, %s3875_s0  }
0x1061   : > { %p3784_p7 = scmp.eq.s32.totalorder %s3876_s24, 1 }
0x1063   : > { %p3180_p9 = pnand %p3179_p8, %p3784_p7 }
0x1065   : > { %p3181_p10 = pneg %p3180_p9 }
0x1067   : > { %p3188_p0 = pnand %p3187_p13, %p3181_p10 }
0x1069   : > { %3191 = shalt.err (!%p3188_p0)
}
0x106a   : > { %s3878_s2 = sld [smem:[#allocation20_spill]] }
0x1070   : > { %s3879_s14 = smov %s3878_s2  ;;  %s3192_s16 = scalar_lea.hbm %s3878_s2, 32 }
0x1071   : > { %p3193_p1 = scmp.ne.s32.totalorder %s3879_s14, %s3192_s16  ;;  %p3198_p4 = scmp.lt.u32.totalorder %s3192_s16, %s3879_s14 }
0x1073   : > { %p3194_p2 = pnand %p3193_p1, %p3784_p7 }
0x1075   : > { %p3195_p3 = pneg %p3194_p2 }
0x1077   : > { %p3200_p5 = pnand %p3198_p4, %p3195_p3 }
0x1079   : > { %3203 = shalt.err (!%p3200_p5)
}
0x107a   : > { %3094 = dma.vmem_to_hbm [thread:$0]  (%p3784_p7), %s2468_s15, 32, %s3879_s14, [#allocation5]  }
0x107b   : > { %3217 = dma.done.wait (%p3784_p7), [#allocation5], 32  }
0x107c   : > { %3219 = vsyncadd (%p3784_p7), [#allocation5], 4294967264 }
0x107d PF: > { %s3880_s3 = sld [smem:[#allocation8_spill]]  ;;  %s3881_s23 = sld [smem:[#allocation7_spill]] }
0x107e   : > { %s3882_s24 = sld [smem:[#allocation9_spill]] }
0x1083   : > { %s33_s2 = sadd.s32 1, %s3880_s3  }
0x1084   : > { %p30_p6 = scmp.ge.s32.totalorder %s33_s2, 4  }
0x1086   :  { %32 = sbr.rel (!%p30_p6) target bundleno = 14 (0xe), region = 169 }
0x108d   :  { %2480 = vsyncpa [#allocation5], 1 }
0x108e   :  { %2482 = vsyncpa [#allocation5 + $0x1], 1 }

</bundles_post_ra>
